<compile_context>
chip_gen: v5e
topology: v5e:2x2
jax: 0.10.0
libtpu: 0.0.40
codegen_flags: <defaults>
</compile_context>

<pallas_src>
import functools

import jax
import jax.numpy as jnp
from jax.experimental import pallas as pl
from jax.experimental.pallas import tpu as pltpu


# ----------------------------------------------------------------------------
# Pallas kernel: fused fwd+bwd LSTM recurrence over one chunk of TC timesteps.
# grid = (T // TC,)   (single sequential axis; both directions per step)
# ----------------------------------------------------------------------------
def _bidir_lstm_chunk_kernel(gihf_ref, gihb_ref, whh_ref, b_ref,
                             outf_ref, outb_ref, hN_ref, cN_ref,
                             h_sc, c_sc):
    tc = pl.program_id(0)
    TC = gihf_ref.shape[1]
    H = h_sc.shape[-1]

    @pl.when(tc == 0)
    def _init():
        # hidden=None in the PyTorch module -> zero initial state
        h_sc[...] = jnp.zeros_like(h_sc)
        c_sc[...] = jnp.zeros_like(c_sc)

    w_f = whh_ref[0]          # (H, 4H) bf16, resident across the whole layer
    w_b = whh_ref[1]
    b_f = b_ref[0:1, :]       # (1, 4H) f32  (bias folded in-kernel, f32 math)
    b_b = b_ref[1:2, :]

    def cell(g_bf16, bias, h_prev, c_prev, w):
        # Only the small recurrent matmul is on the serial critical path.
        gates = (g_bf16.astype(jnp.float32) + bias
                 + jnp.dot(h_prev.astype(jnp.bfloat16), w,
                           preferred_element_type=jnp.float32))
        # PyTorch gate order [i, f, g, o]
        i_g = jax.nn.sigmoid(gates[:, 0 * H:1 * H])
        f_g = jax.nn.sigmoid(gates[:, 1 * H:2 * H])
        g_g = jnp.tanh(gates[:, 2 * H:3 * H])
        o_g = jax.nn.sigmoid(gates[:, 3 * H:4 * H])
        c_new = f_g * c_prev + i_g * g_g
        h_new = o_g * jnp.tanh(c_new)
        return h_new, c_new

    def step(s, carry):
        h_f, c_f, h_b, c_b = carry
        r = TC - 1 - s                      # static under full unroll
        # forward walks the chunk 0..TC-1; backward walks its (reversed) chunk
        # TC-1..0, so both outputs land directly in forward time order.
        h_f, c_f = cell(gihf_ref[0, s], b_f, h_f, c_f, w_f)
        h_b, c_b = cell(gihb_ref[0, r], b_b, h_b, c_b, w_b)
        outf_ref[s] = h_f.astype(outf_ref.dtype)
        outb_ref[r] = h_b.astype(outb_ref.dtype)
        return h_f, c_f, h_b, c_b

    # h/c carried in vregs across the chunk; scratch touched once per chunk.
    carry0 = (h_sc[0], c_sc[0], h_sc[1], c_sc[1])
    unroll = True if TC <= 8 else 8
    h_f, c_f, h_b, c_b = jax.lax.fori_loop(0, TC, step, carry0, unroll=unroll)
    h_sc[0] = h_f
    c_sc[0] = c_f
    h_sc[1] = h_b
    c_sc[1] = c_b

    # final states: only the last chunk's write matters
    @pl.when(tc == pl.num_programs(0) - 1)
    def _final():
        hN_ref[0] = h_f
        cN_ref[0] = c_f
        hN_ref[1] = h_b
        cN_ref[1] = c_b


def _pick_time_chunk(T, B, H, max_chunk=32, budget_bytes=24 << 20):
    """Largest divisor of T (<= max_chunk) whose streamed VMEM blocks fit budget."""
    def streamed_bytes(tc):
        gih = tc * B * 4 * H * 2          # bf16 gih block, one direction
        out = tc * B * H * 2              # bf16 out block, one direction
        return 2 * 2 * (gih + out)        # 2 directions x double buffering

    resident = (2 * H * 4 * H * 2         # w_hh (bf16)
                + 2 * 4 * H * 4           # bias (f32)
                + 4 * 2 * B * H * 4)      # hN/cN outputs + h/c scratch (f32)
    best = 1
    for c in range(1, min(T, max_chunk) + 1):
        if T % c == 0 and streamed_bytes(c) + resident <= budget_bytes:
            best = c
    return best
    # TODO(synk): for prime/awkward T consider padding T instead of TC=1.


def bidir_lstm_layer(gih, w_hh, b):
    """Run both directions of one LSTM layer (fused per timestep).

    gih : (2, T, B, 4H) bf16 -- precomputed x @ W_ih per direction (no bias)
    w_hh: (2, H, 4H)    bf16 -- recurrent weights per direction
    b   : (2, 4H)       f32  -- combined bias (b_ih + b_hh) per direction
    Returns out_f (T,B,H) bf16, out_b (T,B,H) bf16 (both in forward time
    order), h_n (2,B,H) f32, c_n (2,B,H) f32.
    """
    _, T, B, G = gih.shape
    H = G // 4
    TC = _pick_time_chunk(T, B, H)
    NC = T // TC

    out_f, out_b, h_n, c_n = pl.pallas_call(
        _bidir_lstm_chunk_kernel,
        out_shape=(jax.ShapeDtypeStruct((T, B, H), jnp.bfloat16),
                   jax.ShapeDtypeStruct((T, B, H), jnp.bfloat16),
                   jax.ShapeDtypeStruct((2, B, H), jnp.float32),
                   jax.ShapeDtypeStruct((2, B, H), jnp.float32)),
        grid_spec=pltpu.PrefetchScalarGridSpec(
            num_scalar_prefetch=0,
            grid=(NC,),
            in_specs=[
                # forward gih chunks, streamed in forward chunk order
                pl.BlockSpec((1, TC, B, 4 * H), lambda t: (0, t, 0, 0)),
                # backward gih chunks, streamed in reversed chunk order
                pl.BlockSpec((1, TC, B, 4 * H), lambda t: (1, NC - 1 - t, 0, 0)),
                pl.BlockSpec((2, H, 4 * H), lambda t: (0, 0, 0)),
                pl.BlockSpec((2, 4 * H), lambda t: (0, 0)),
            ],
            out_specs=[
                pl.BlockSpec((TC, B, H), lambda t: (t, 0, 0)),
                pl.BlockSpec((TC, B, H), lambda t: (NC - 1 - t, 0, 0)),
                pl.BlockSpec((2, B, H), lambda t: (0, 0, 0)),
                pl.BlockSpec((2, B, H), lambda t: (0, 0, 0)),
            ],
            scratch_shapes=[pltpu.VMEM((2, B, H), jnp.float32),   # h carry
                            pltpu.VMEM((2, B, H), jnp.float32)],  # c carry
        ),
        compiler_params=pltpu.CompilerParams(
            dimension_semantics=("arbitrary",),
            vmem_limit_bytes=48 * 1024 * 1024),
    )(gih, gih, w_hh, b)
    return out_f, out_b, h_n, c_n


# ----------------------------------------------------------------------------
# Encoder forward: embedding lookup + hoisted input projections + recurrence.
# ----------------------------------------------------------------------------
def encoder_forward(input_seq, params, num_layers):
    """input_seq: (B, T) int32 token ids.

    Returns (outputs, (h_n, c_n)) with
      outputs: (B, T, 2*H) f32
      h_n, c_n: (num_layers * 2, B, H) f32  order: l0_fwd, l0_bwd, l1_fwd, ...
    """
    emb = jnp.take(params["embedding"], input_seq, axis=0)        # (B, T, E) f32
    B, T, _ = emb.shape
    x = jnp.transpose(emb, (1, 0, 2)).astype(jnp.bfloat16)        # (T, B, E)

    h_list, c_list = [], []
    out_f = out_b = None
    H = None
    for layer in range(num_layers):
        lp = params["layers"][layer]
        w_ih, w_hh, b = lp["w_ih"], lp["w_hh"], lp["b"]           # bf16, bf16, f32
        H = w_hh.shape[1]
        if layer == 0:
            # one big, well-shaped matmul over all timesteps and both directions
            gih = jnp.einsum("tbd,zdg->ztbg", x, w_ih,
                             preferred_element_type=jnp.float32)
        else:
            # consume the previous layer's bf16 per-direction outputs directly
            # (no (T, B, 2H) concatenate): split W_ih along its input halves.
            gih = (jnp.einsum("tbh,zhg->ztbg", out_f, w_ih[:, :H],
                              preferred_element_type=jnp.float32)
                   + jnp.einsum("tbh,zhg->ztbg", out_b, w_ih[:, H:],
                                preferred_element_type=jnp.float32))
        # stream bf16 to the kernel; bias is added in-kernel in f32
        gih = gih.astype(jnp.bfloat16)

        out_f, out_b, h_n, c_n = bidir_lstm_layer(gih, w_hh, b)
        h_list.append(h_n)
        c_list.append(c_n)
        # TODO(synk): inter-layer dropout skipped (PyTorch nn.LSTM dropout is
        # inactive in eval mode; forward semantics preserved for inference).

    # (T, B, H) x2 -> (B, T, 2H): fwd features first, then bwd (PyTorch order).
    outputs = jnp.concatenate(
        [jnp.transpose(out_f, (1, 0, 2)), jnp.transpose(out_b, (1, 0, 2))],
        axis=-1).astype(jnp.float32)
    h_n = jnp.concatenate(h_list, axis=0)                         # (2*L, B, H)
    c_n = jnp.concatenate(c_list, axis=0)
    return outputs, (h_n, c_n)


# ----------------------------------------------------------------------------
# Deterministic parameter construction (mirrors nn.Embedding + nn.LSTM shapes).
# ----------------------------------------------------------------------------
def init_params(key, vocab_size, embedding_dim, hidden_size, num_layers):
    keys = jax.random.split(key, 1 + num_layers * 2)
    params = {
        "embedding": jax.random.normal(
            keys[0], (vocab_size, embedding_dim), jnp.float32),
        "layers": [],
    }
    k = 1.0 / jnp.sqrt(hidden_size)
    for layer in range(num_layers):
        in_dim = embedding_dim if layer == 0 else 2 * hidden_size
        w_ih_d, w_hh_d, b_d = [], [], []
        for d in range(2):
            sub = jax.random.split(keys[1 + 2 * layer + d], 4)
            # stored transposed vs PyTorch: (in_dim, 4H), (H, 4H)
            w_ih = jax.random.uniform(sub[0], (in_dim, 4 * hidden_size),
                                      jnp.float32, -k, k)
            w_hh = jax.random.uniform(sub[1], (hidden_size, 4 * hidden_size),
                                      jnp.float32, -k, k)
            b_ih = jax.random.uniform(sub[2], (4 * hidden_size,),
                                      jnp.float32, -k, k)
            b_hh = jax.random.uniform(sub[3], (4 * hidden_size,),
                                      jnp.float32, -k, k)
            w_ih_d.append(w_ih)
            w_hh_d.append(w_hh)
            b_d.append(b_ih + b_hh)
        params["layers"].append({
            "w_ih": jnp.stack(w_ih_d).astype(jnp.bfloat16),   # (2, in_dim, 4H)
            "w_hh": jnp.stack(w_hh_d).astype(jnp.bfloat16),   # (2, H, 4H)
            "b":    jnp.stack(b_d),                           # (2, 4H) f32
        })
    return params


if __name__ == "__main__":
    # Small deterministic config consistent with the module's forward.
    VOCAB = 32
    EMB = 16
    HIDDEN = 32
    NUM_LAYERS = 2
    BATCH = 2
    SEQ = 8

    key = jax.random.PRNGKey(0)
    pkey, dkey = jax.random.split(key)
    params = init_params(pkey, VOCAB, EMB, HIDDEN, NUM_LAYERS)
    input_seq = jax.random.randint(dkey, (BATCH, SEQ), 0, VOCAB, dtype=jnp.int32)

    fwd = jax.jit(functools.partial(encoder_forward, num_layers=NUM_LAYERS))
    outputs, (h_n, c_n) = fwd(input_seq, params)
    jax.block_until_ready((outputs, h_n, c_n))

    assert outputs.shape == (BATCH, SEQ, 2 * HIDDEN)
    assert h_n.shape == (NUM_LAYERS * 2, BATCH, HIDDEN)
    assert c_n.shape == (NUM_LAYERS * 2, BATCH, HIDDEN)
    assert bool(jnp.all(jnp.isfinite(outputs)))
    assert bool(jnp.all(jnp.isfinite(h_n))) and bool(jnp.all(jnp.isfinite(c_n)))
    print("KERNEL_OK")
</pallas_src>

<mosaic_0001>
module attributes {stable_mosaic.version = 11 : i64} {
  func.func @_bidir_lstm_chunk_kernel(%arg0: i32, %arg1: memref<1x8x2x128xbf16, #tpu.memory_space<vmem>>, %arg2: memref<1x8x2x128xbf16, #tpu.memory_space<vmem>>, %arg3: memref<2x32x128xbf16, #tpu.memory_space<vmem>>, %arg4: memref<2x128xf32, #tpu.memory_space<vmem>>, %arg5: memref<8x2x32xbf16, #tpu.memory_space<vmem>>, %arg6: memref<8x2x32xbf16, #tpu.memory_space<vmem>>, %arg7: memref<2x2x32xf32, #tpu.memory_space<vmem>>, %arg8: memref<2x2x32xf32, #tpu.memory_space<vmem>>, %arg9: memref<2x2x32xf32, #tpu.memory_space<vmem>>, %arg10: memref<2x2x32xf32, #tpu.memory_space<vmem>>) attributes {dimension_semantics = [#tpu.dimension_semantics<arbitrary>], iteration_bounds = array<i64: 1>, scalar_prefetch = 0 : i64, scratch_operands = 2 : i64, tpu.core_type = #tpu.core_type<tc>, window_params = [{transform_indices = @transform_0, window_bounds = array<i64: 1, 8, 2, 128>}, {transform_indices = @transform_1, window_bounds = array<i64: 1, 8, 2, 128>}, {pipeline_mode = #tpu.pipeline_mode<synchronous>, transform_indices = @transform_2, window_bounds = array<i64: 2, 32, 128>}, {pipeline_mode = #tpu.pipeline_mode<synchronous>, transform_indices = @transform_3, window_bounds = array<i64: 2, 128>}, {transform_indices = @transform_4, window_bounds = array<i64: 8, 2, 32>}, {transform_indices = @transform_5, window_bounds = array<i64: 8, 2, 32>}, {pipeline_mode = #tpu.pipeline_mode<synchronous>, transform_indices = @transform_6, window_bounds = array<i64: 2, 2, 32>}, {pipeline_mode = #tpu.pipeline_mode<synchronous>, transform_indices = @transform_7, window_bounds = array<i64: 2, 2, 32>}]} {
    %c0_i32 = arith.constant 0 : i32
    %0 = arith.cmpi eq, %arg0, %c0_i32 : i32
    %1 = arith.extui %0 : i1 to i32
    %c0_i32_0 = arith.constant 0 : i32
    %2 = arith.cmpi ne, %1, %c0_i32_0 : i32
    scf.if %2 {
      %cst_187 = arith.constant 0.000000e+00 : f32
      %664 = vector.broadcast %cst_187 : f32 to vector<2x2x32xf32>
      %c0_188 = arith.constant 0 : index
      %c0_189 = arith.constant 0 : index
      %c0_190 = arith.constant 0 : index
      %665 = vector.load %arg9[%c0_188, %c0_189, %c0_190] : memref<2x2x32xf32, #tpu.memory_space<vmem>>, vector<2x2x32xf32>
      tpu.vector_store %arg9[%c0_188, %c0_189, %c0_190], %664 {strides = array<i32>} : memref<2x2x32xf32, #tpu.memory_space<vmem>>, vector<2x2x32xf32>,
      %cst_191 = arith.constant 0.000000e+00 : f32
      %666 = vector.broadcast %cst_191 : f32 to vector<2x2x32xf32>
      %c0_192 = arith.constant 0 : index
      %c0_193 = arith.constant 0 : index
      %c0_194 = arith.constant 0 : index
      %667 = vector.load %arg10[%c0_192, %c0_193, %c0_194] : memref<2x2x32xf32, #tpu.memory_space<vmem>>, vector<2x2x32xf32>
      tpu.vector_store %arg10[%c0_192, %c0_193, %c0_194], %666 {strides = array<i32>} : memref<2x2x32xf32, #tpu.memory_space<vmem>>, vector<2x2x32xf32>,
    } else {
    }
    %c0 = arith.constant 0 : index
    %c0_1 = arith.constant 0 : index
    %c0_2 = arith.constant 0 : index
    %3 = vector.load %arg3[%c0, %c0_1, %c0_2] : memref<2x32x128xbf16, #tpu.memory_space<vmem>>, vector<1x32x128xbf16>
    %4 = vector.shape_cast %3 : vector<1x32x128xbf16> to vector<32x128xbf16>
    %c1 = arith.constant 1 : index
    %c0_3 = arith.constant 0 : index
    %c0_4 = arith.constant 0 : index
    %5 = vector.load %arg3[%c1, %c0_3, %c0_4] : memref<2x32x128xbf16, #tpu.memory_space<vmem>>, vector<1x32x128xbf16>
    %6 = vector.shape_cast %5 : vector<1x32x128xbf16> to vector<32x128xbf16>
    %c0_5 = arith.constant 0 : index
    %c0_6 = arith.constant 0 : index
    %7 = vector.load %arg4[%c0_5, %c0_6] : memref<2x128xf32, #tpu.memory_space<vmem>>, vector<1x128xf32>
    %c1_7 = arith.constant 1 : index
    %c0_8 = arith.constant 0 : index
    %8 = vector.load %arg4[%c1_7, %c0_8] : memref<2x128xf32, #tpu.memory_space<vmem>>, vector<1x128xf32>
    %c0_9 = arith.constant 0 : index
    %c0_10 = arith.constant 0 : index
    %c0_11 = arith.constant 0 : index
    %9 = vector.load %arg9[%c0_9, %c0_10, %c0_11] : memref<2x2x32xf32, #tpu.memory_space<vmem>>, vector<1x2x32xf32>
    %10 = vector.shape_cast %9 : vector<1x2x32xf32> to vector<2x32xf32>
    %c0_12 = arith.constant 0 : index
    %c0_13 = arith.constant 0 : index
    %c0_14 = arith.constant 0 : index
    %11 = vector.load %arg10[%c0_12, %c0_13, %c0_14] : memref<2x2x32xf32, #tpu.memory_space<vmem>>, vector<1x2x32xf32>
    %12 = vector.shape_cast %11 : vector<1x2x32xf32> to vector<2x32xf32>
    %c1_15 = arith.constant 1 : index
    %c0_16 = arith.constant 0 : index
    %c0_17 = arith.constant 0 : index
    %13 = vector.load %arg9[%c1_15, %c0_16, %c0_17] : memref<2x2x32xf32, #tpu.memory_space<vmem>>, vector<1x2x32xf32>
    %14 = vector.shape_cast %13 : vector<1x2x32xf32> to vector<2x32xf32>
    %c1_18 = arith.constant 1 : index
    %c0_19 = arith.constant 0 : index
    %c0_20 = arith.constant 0 : index
    %15 = vector.load %arg10[%c1_18, %c0_19, %c0_20] : memref<2x2x32xf32, #tpu.memory_space<vmem>>, vector<1x2x32xf32>
    %16 = vector.shape_cast %15 : vector<1x2x32xf32> to vector<2x32xf32>
    %c0_i32_21 = arith.constant 0 : i32
    %c7_i32 = arith.constant 7 : i32
    %17 = arith.subi %c7_i32, %c0_i32_21 : i32
    %c0_22 = arith.constant 0 : index
    %18 = arith.index_cast %c0_i32_21 : i32 to index
    %c0_23 = arith.constant 0 : index
    %c0_24 = arith.constant 0 : index
    %19 = vector.load %arg1[%c0_22, %18, %c0_23, %c0_24] : memref<1x8x2x128xbf16, #tpu.memory_space<vmem>>, vector<1x1x2x128xbf16>
    %20 = vector.shape_cast %19 : vector<1x1x2x128xbf16> to vector<2x128xbf16>
    %21 = arith.extf %20 : vector<2x128xbf16> to vector<2x128xf32>
    %22 = vector.broadcast %7 : vector<1x128xf32> to vector<2x128xf32>
    %23 = arith.addf %21, %22 : vector<2x128xf32>
    %24 = arith.truncf %10 : vector<2x32xf32> to vector<2x32xbf16>
    %cst = arith.constant dense<0.000000e+00> : vector<2x128xf32>
    %25 = tpu.matmul %24, %4, %cst {dimension_numbers = #tpu.dot_dimension_numbers<[1], [0], [0], [1], [0, 0, 1, 1], [], []>} : vector<2x32xbf16>, vector<32x128xbf16>, vector<2x128xf32> -> vector<2x128xf32>
    %26 = arith.addf %23, %25 : vector<2x128xf32>
    %27 = vector.extract_strided_slice %26 {offsets = [0, 0], sizes = [2, 32], strides = [1, 1]} : vector<2x128xf32> to vector<2x32xf32>
    %28 = arith.negf %27 : vector<2x32xf32>
    %29 = math.exp %28 : vector<2x32xf32>
    %cst_25 = arith.constant 1.000000e+00 : f32
    %30 = vector.broadcast %cst_25 : f32 to vector<2x32xf32>
    %31 = arith.addf %30, %29 : vector<2x32xf32>
    %32 = arith.divf %30, %31 : vector<2x32xf32>
    %33 = vector.extract_strided_slice %26 {offsets = [0, 32], sizes = [2, 32], strides = [1, 1]} : vector<2x128xf32> to vector<2x32xf32>
    %34 = arith.negf %33 : vector<2x32xf32>
    %35 = math.exp %34 : vector<2x32xf32>
    %cst_26 = arith.constant 1.000000e+00 : f32
    %36 = vector.broadcast %cst_26 : f32 to vector<2x32xf32>
    %37 = arith.addf %36, %35 : vector<2x32xf32>
    %38 = arith.divf %36, %37 : vector<2x32xf32>
    %39 = vector.extract_strided_slice %26 {offsets = [0, 64], sizes = [2, 32], strides = [1, 1]} : vector<2x128xf32> to vector<2x32xf32>
    %40 = math.tanh %39 : vector<2x32xf32>
    %41 = vector.extract_strided_slice %26 {offsets = [0, 96], sizes = [2, 32], strides = [1, 1]} : vector<2x128xf32> to vector<2x32xf32>
    %42 = arith.negf %41 : vector<2x32xf32>
    %43 = math.exp %42 : vector<2x32xf32>
    %cst_27 = arith.constant 1.000000e+00 : f32
    %44 = vector.broadcast %cst_27 : f32 to vector<2x32xf32>
    %45 = arith.addf %44, %43 : vector<2x32xf32>
    %46 = arith.divf %44, %45 : vector<2x32xf32>
    %47 = arith.mulf %38, %12 : vector<2x32xf32>
    %48 = arith.mulf %32, %40 : vector<2x32xf32>
    %49 = arith.addf %47, %48 : vector<2x32xf32>
    %50 = math.tanh %49 : vector<2x32xf32>
    %51 = arith.mulf %46, %50 : vector<2x32xf32>
    %c0_28 = arith.constant 0 : index
    %52 = arith.index_cast %17 : i32 to index
    %c0_29 = arith.constant 0 : index
    %c0_30 = arith.constant 0 : index
    %53 = vector.load %arg2[%c0_28, %52, %c0_29, %c0_30] : memref<1x8x2x128xbf16, #tpu.memory_space<vmem>>, vector<1x1x2x128xbf16>
    %54 = vector.shape_cast %53 : vector<1x1x2x128xbf16> to vector<2x128xbf16>
    %55 = arith.extf %54 : vector<2x128xbf16> to vector<2x128xf32>
    %56 = vector.broadcast %8 : vector<1x128xf32> to vector<2x128xf32>
    %57 = arith.addf %55, %56 : vector<2x128xf32>
    %58 = arith.truncf %14 : vector<2x32xf32> to vector<2x32xbf16>
    %cst_31 = arith.constant dense<0.000000e+00> : vector<2x128xf32>
    %59 = tpu.matmul %58, %6, %cst_31 {dimension_numbers = #tpu.dot_dimension_numbers<[1], [0], [0], [1], [0, 0, 1, 1], [], []>} : vector<2x32xbf16>, vector<32x128xbf16>, vector<2x128xf32> -> vector<2x128xf32>
    %60 = arith.addf %57, %59 : vector<2x128xf32>
    %61 = vector.extract_strided_slice %60 {offsets = [0, 0], sizes = [2, 32], strides = [1, 1]} : vector<2x128xf32> to vector<2x32xf32>
    %62 = arith.negf %61 : vector<2x32xf32>
    %63 = math.exp %62 : vector<2x32xf32>
    %cst_32 = arith.constant 1.000000e+00 : f32
    %64 = vector.broadcast %cst_32 : f32 to vector<2x32xf32>
    %65 = arith.addf %64, %63 : vector<2x32xf32>
    %66 = arith.divf %64, %65 : vector<2x32xf32>
    %67 = vector.extract_strided_slice %60 {offsets = [0, 32], sizes = [2, 32], strides = [1, 1]} : vector<2x128xf32> to vector<2x32xf32>
    %68 = arith.negf %67 : vector<2x32xf32>
    %69 = math.exp %68 : vector<2x32xf32>
    %cst_33 = arith.constant 1.000000e+00 : f32
    %70 = vector.broadcast %cst_33 : f32 to vector<2x32xf32>
    %71 = arith.addf %70, %69 : vector<2x32xf32>
    %72 = arith.divf %70, %71 : vector<2x32xf32>
    %73 = vector.extract_strided_slice %60 {offsets = [0, 64], sizes = [2, 32], strides = [1, 1]} : vector<2x128xf32> to vector<2x32xf32>
    %74 = math.tanh %73 : vector<2x32xf32>
    %75 = vector.extract_strided_slice %60 {offsets = [0, 96], sizes = [2, 32], strides = [1, 1]} : vector<2x128xf32> to vector<2x32xf32>
    %76 = arith.negf %75 : vector<2x32xf32>
    %77 = math.exp %76 : vector<2x32xf32>
    %cst_34 = arith.constant 1.000000e+00 : f32
    %78 = vector.broadcast %cst_34 : f32 to vector<2x32xf32>
    %79 = arith.addf %78, %77 : vector<2x32xf32>
    %80 = arith.divf %78, %79 : vector<2x32xf32>
    %81 = arith.mulf %72, %16 : vector<2x32xf32>
    %82 = arith.mulf %66, %74 : vector<2x32xf32>
    %83 = arith.addf %81, %82 : vector<2x32xf32>
    %84 = math.tanh %83 : vector<2x32xf32>
    %85 = arith.mulf %80, %84 : vector<2x32xf32>
    %86 = arith.truncf %51 : vector<2x32xf32> to vector<2x32xbf16>
    %87 = arith.index_cast %c0_i32_21 : i32 to index
    %c0_35 = arith.constant 0 : index
    %c0_36 = arith.constant 0 : index
    %88 = vector.load %arg5[%87, %c0_35, %c0_36] : memref<8x2x32xbf16, #tpu.memory_space<vmem>>, vector<1x2x32xbf16>
    %89 = vector.shape_cast %88 : vector<1x2x32xbf16> to vector<2x32xbf16>
    %90 = vector.shape_cast %86 : vector<2x32xbf16> to vector<1x2x32xbf16>
    tpu.vector_store %arg5[%87, %c0_35, %c0_36], %90 {strides = array<i32>} : memref<8x2x32xbf16, #tpu.memory_space<vmem>>, vector<1x2x32xbf16>,
    %91 = arith.truncf %85 : vector<2x32xf32> to vector<2x32xbf16>
    %92 = arith.index_cast %17 : i32 to index
    %c0_37 = arith.constant 0 : index
    %c0_38 = arith.constant 0 : index
    %93 = vector.load %arg6[%92, %c0_37, %c0_38] : memref<8x2x32xbf16, #tpu.memory_space<vmem>>, vector<1x2x32xbf16>
    %94 = vector.shape_cast %93 : vector<1x2x32xbf16> to vector<2x32xbf16>
    %95 = vector.shape_cast %91 : vector<2x32xbf16> to vector<1x2x32xbf16>
    tpu.vector_store %arg6[%92, %c0_37, %c0_38], %95 {strides = array<i32>} : memref<8x2x32xbf16, #tpu.memory_space<vmem>>, vector<1x2x32xbf16>,
    %c1_i32 = arith.constant 1 : i32
    %c7_i32_39 = arith.constant 7 : i32
    %96 = arith.subi %c7_i32_39, %c1_i32 : i32
    %c0_40 = arith.constant 0 : index
    %97 = arith.index_cast %c1_i32 : i32 to index
    %c0_41 = arith.constant 0 : index
    %c0_42 = arith.constant 0 : index
    %98 = vector.load %arg1[%c0_40, %97, %c0_41, %c0_42] : memref<1x8x2x128xbf16, #tpu.memory_space<vmem>>, vector<1x1x2x128xbf16>
    %99 = vector.shape_cast %98 : vector<1x1x2x128xbf16> to vector<2x128xbf16>
    %100 = arith.extf %99 : vector<2x128xbf16> to vector<2x128xf32>
    %101 = vector.broadcast %7 : vector<1x128xf32> to vector<2x128xf32>
    %102 = arith.addf %100, %101 : vector<2x128xf32>
    %103 = arith.truncf %51 : vector<2x32xf32> to vector<2x32xbf16>
    %cst_43 = arith.constant dense<0.000000e+00> : vector<2x128xf32>
    %104 = tpu.matmul %103, %4, %cst_43 {dimension_numbers = #tpu.dot_dimension_numbers<[1], [0], [0], [1], [0, 0, 1, 1], [], []>} : vector<2x32xbf16>, vector<32x128xbf16>, vector<2x128xf32> -> vector<2x128xf32>
    %105 = arith.addf %102, %104 : vector<2x128xf32>
    %106 = vector.extract_strided_slice %105 {offsets = [0, 0], sizes = [2, 32], strides = [1, 1]} : vector<2x128xf32> to vector<2x32xf32>
    %107 = arith.negf %106 : vector<2x32xf32>
    %108 = math.exp %107 : vector<2x32xf32>
    %cst_44 = arith.constant 1.000000e+00 : f32
    %109 = vector.broadcast %cst_44 : f32 to vector<2x32xf32>
    %110 = arith.addf %109, %108 : vector<2x32xf32>
    %111 = arith.divf %109, %110 : vector<2x32xf32>
    %112 = vector.extract_strided_slice %105 {offsets = [0, 32], sizes = [2, 32], strides = [1, 1]} : vector<2x128xf32> to vector<2x32xf32>
    %113 = arith.negf %112 : vector<2x32xf32>
    %114 = math.exp %113 : vector<2x32xf32>
    %cst_45 = arith.constant 1.000000e+00 : f32
    %115 = vector.broadcast %cst_45 : f32 to vector<2x32xf32>
    %116 = arith.addf %115, %114 : vector<2x32xf32>
    %117 = arith.divf %115, %116 : vector<2x32xf32>
    %118 = vector.extract_strided_slice %105 {offsets = [0, 64], sizes = [2, 32], strides = [1, 1]} : vector<2x128xf32> to vector<2x32xf32>
    %119 = math.tanh %118 : vector<2x32xf32>
    %120 = vector.extract_strided_slice %105 {offsets = [0, 96], sizes = [2, 32], strides = [1, 1]} : vector<2x128xf32> to vector<2x32xf32>
    %121 = arith.negf %120 : vector<2x32xf32>
    %122 = math.exp %121 : vector<2x32xf32>
    %cst_46 = arith.constant 1.000000e+00 : f32
    %123 = vector.broadcast %cst_46 : f32 to vector<2x32xf32>
    %124 = arith.addf %123, %122 : vector<2x32xf32>
    %125 = arith.divf %123, %124 : vector<2x32xf32>
    %126 = arith.mulf %117, %49 : vector<2x32xf32>
    %127 = arith.mulf %111, %119 : vector<2x32xf32>
    %128 = arith.addf %126, %127 : vector<2x32xf32>
    %129 = math.tanh %128 : vector<2x32xf32>
    %130 = arith.mulf %125, %129 : vector<2x32xf32>
    %c0_47 = arith.constant 0 : index
    %131 = arith.index_cast %96 : i32 to index
    %c0_48 = arith.constant 0 : index
    %c0_49 = arith.constant 0 : index
    %132 = vector.load %arg2[%c0_47, %131, %c0_48, %c0_49] : memref<1x8x2x128xbf16, #tpu.memory_space<vmem>>, vector<1x1x2x128xbf16>
    %133 = vector.shape_cast %132 : vector<1x1x2x128xbf16> to vector<2x128xbf16>
    %134 = arith.extf %133 : vector<2x128xbf16> to vector<2x128xf32>
    %135 = vector.broadcast %8 : vector<1x128xf32> to vector<2x128xf32>
    %136 = arith.addf %134, %135 : vector<2x128xf32>
    %137 = arith.truncf %85 : vector<2x32xf32> to vector<2x32xbf16>
    %cst_50 = arith.constant dense<0.000000e+00> : vector<2x128xf32>
    %138 = tpu.matmul %137, %6, %cst_50 {dimension_numbers = #tpu.dot_dimension_numbers<[1], [0], [0], [1], [0, 0, 1, 1], [], []>} : vector<2x32xbf16>, vector<32x128xbf16>, vector<2x128xf32> -> vector<2x128xf32>
    %139 = arith.addf %136, %138 : vector<2x128xf32>
    %140 = vector.extract_strided_slice %139 {offsets = [0, 0], sizes = [2, 32], strides = [1, 1]} : vector<2x128xf32> to vector<2x32xf32>
    %141 = arith.negf %140 : vector<2x32xf32>
    %142 = math.exp %141 : vector<2x32xf32>
    %cst_51 = arith.constant 1.000000e+00 : f32
    %143 = vector.broadcast %cst_51 : f32 to vector<2x32xf32>
    %144 = arith.addf %143, %142 : vector<2x32xf32>
    %145 = arith.divf %143, %144 : vector<2x32xf32>
    %146 = vector.extract_strided_slice %139 {offsets = [0, 32], sizes = [2, 32], strides = [1, 1]} : vector<2x128xf32> to vector<2x32xf32>
    %147 = arith.negf %146 : vector<2x32xf32>
    %148 = math.exp %147 : vector<2x32xf32>
    %cst_52 = arith.constant 1.000000e+00 : f32
    %149 = vector.broadcast %cst_52 : f32 to vector<2x32xf32>
    %150 = arith.addf %149, %148 : vector<2x32xf32>
    %151 = arith.divf %149, %150 : vector<2x32xf32>
    %152 = vector.extract_strided_slice %139 {offsets = [0, 64], sizes = [2, 32], strides = [1, 1]} : vector<2x128xf32> to vector<2x32xf32>
    %153 = math.tanh %152 : vector<2x32xf32>
    %154 = vector.extract_strided_slice %139 {offsets = [0, 96], sizes = [2, 32], strides = [1, 1]} : vector<2x128xf32> to vector<2x32xf32>
    %155 = arith.negf %154 : vector<2x32xf32>
    %156 = math.exp %155 : vector<2x32xf32>
    %cst_53 = arith.constant 1.000000e+00 : f32
    %157 = vector.broadcast %cst_53 : f32 to vector<2x32xf32>
    %158 = arith.addf %157, %156 : vector<2x32xf32>
    %159 = arith.divf %157, %158 : vector<2x32xf32>
    %160 = arith.mulf %151, %83 : vector<2x32xf32>
    %161 = arith.mulf %145, %153 : vector<2x32xf32>
    %162 = arith.addf %160, %161 : vector<2x32xf32>
    %163 = math.tanh %162 : vector<2x32xf32>
    %164 = arith.mulf %159, %163 : vector<2x32xf32>
    %165 = arith.truncf %130 : vector<2x32xf32> to vector<2x32xbf16>
    %166 = arith.index_cast %c1_i32 : i32 to index
    %c0_54 = arith.constant 0 : index
    %c0_55 = arith.constant 0 : index
    %167 = vector.load %arg5[%166, %c0_54, %c0_55] : memref<8x2x32xbf16, #tpu.memory_space<vmem>>, vector<1x2x32xbf16>
    %168 = vector.shape_cast %167 : vector<1x2x32xbf16> to vector<2x32xbf16>
    %169 = vector.shape_cast %165 : vector<2x32xbf16> to vector<1x2x32xbf16>
    tpu.vector_store %arg5[%166, %c0_54, %c0_55], %169 {strides = array<i32>} : memref<8x2x32xbf16, #tpu.memory_space<vmem>>, vector<1x2x32xbf16>,
    %170 = arith.truncf %164 : vector<2x32xf32> to vector<2x32xbf16>
    %171 = arith.index_cast %96 : i32 to index
    %c0_56 = arith.constant 0 : index
    %c0_57 = arith.constant 0 : index
    %172 = vector.load %arg6[%171, %c0_56, %c0_57] : memref<8x2x32xbf16, #tpu.memory_space<vmem>>, vector<1x2x32xbf16>
    %173 = vector.shape_cast %172 : vector<1x2x32xbf16> to vector<2x32xbf16>
    %174 = vector.shape_cast %170 : vector<2x32xbf16> to vector<1x2x32xbf16>
    tpu.vector_store %arg6[%171, %c0_56, %c0_57], %174 {strides = array<i32>} : memref<8x2x32xbf16, #tpu.memory_space<vmem>>, vector<1x2x32xbf16>,
    %c2_i32 = arith.constant 2 : i32
    %c7_i32_58 = arith.constant 7 : i32
    %175 = arith.subi %c7_i32_58, %c2_i32 : i32
    %c0_59 = arith.constant 0 : index
    %176 = arith.index_cast %c2_i32 : i32 to index
    %c0_60 = arith.constant 0 : index
    %c0_61 = arith.constant 0 : index
    %177 = vector.load %arg1[%c0_59, %176, %c0_60, %c0_61] : memref<1x8x2x128xbf16, #tpu.memory_space<vmem>>, vector<1x1x2x128xbf16>
    %178 = vector.shape_cast %177 : vector<1x1x2x128xbf16> to vector<2x128xbf16>
    %179 = arith.extf %178 : vector<2x128xbf16> to vector<2x128xf32>
    %180 = vector.broadcast %7 : vector<1x128xf32> to vector<2x128xf32>
    %181 = arith.addf %179, %180 : vector<2x128xf32>
    %182 = arith.truncf %130 : vector<2x32xf32> to vector<2x32xbf16>
    %cst_62 = arith.constant dense<0.000000e+00> : vector<2x128xf32>
    %183 = tpu.matmul %182, %4, %cst_62 {dimension_numbers = #tpu.dot_dimension_numbers<[1], [0], [0], [1], [0, 0, 1, 1], [], []>} : vector<2x32xbf16>, vector<32x128xbf16>, vector<2x128xf32> -> vector<2x128xf32>
    %184 = arith.addf %181, %183 : vector<2x128xf32>
    %185 = vector.extract_strided_slice %184 {offsets = [0, 0], sizes = [2, 32], strides = [1, 1]} : vector<2x128xf32> to vector<2x32xf32>
    %186 = arith.negf %185 : vector<2x32xf32>
    %187 = math.exp %186 : vector<2x32xf32>
    %cst_63 = arith.constant 1.000000e+00 : f32
    %188 = vector.broadcast %cst_63 : f32 to vector<2x32xf32>
    %189 = arith.addf %188, %187 : vector<2x32xf32>
    %190 = arith.divf %188, %189 : vector<2x32xf32>
    %191 = vector.extract_strided_slice %184 {offsets = [0, 32], sizes = [2, 32], strides = [1, 1]} : vector<2x128xf32> to vector<2x32xf32>
    %192 = arith.negf %191 : vector<2x32xf32>
    %193 = math.exp %192 : vector<2x32xf32>
    %cst_64 = arith.constant 1.000000e+00 : f32
    %194 = vector.broadcast %cst_64 : f32 to vector<2x32xf32>
    %195 = arith.addf %194, %193 : vector<2x32xf32>
    %196 = arith.divf %194, %195 : vector<2x32xf32>
    %197 = vector.extract_strided_slice %184 {offsets = [0, 64], sizes = [2, 32], strides = [1, 1]} : vector<2x128xf32> to vector<2x32xf32>
    %198 = math.tanh %197 : vector<2x32xf32>
    %199 = vector.extract_strided_slice %184 {offsets = [0, 96], sizes = [2, 32], strides = [1, 1]} : vector<2x128xf32> to vector<2x32xf32>
    %200 = arith.negf %199 : vector<2x32xf32>
    %201 = math.exp %200 : vector<2x32xf32>
    %cst_65 = arith.constant 1.000000e+00 : f32
    %202 = vector.broadcast %cst_65 : f32 to vector<2x32xf32>
    %203 = arith.addf %202, %201 : vector<2x32xf32>
    %204 = arith.divf %202, %203 : vector<2x32xf32>
    %205 = arith.mulf %196, %128 : vector<2x32xf32>
    %206 = arith.mulf %190, %198 : vector<2x32xf32>
    %207 = arith.addf %205, %206 : vector<2x32xf32>
    %208 = math.tanh %207 : vector<2x32xf32>
    %209 = arith.mulf %204, %208 : vector<2x32xf32>
    %c0_66 = arith.constant 0 : index
    %210 = arith.index_cast %175 : i32 to index
    %c0_67 = arith.constant 0 : index
    %c0_68 = arith.constant 0 : index
    %211 = vector.load %arg2[%c0_66, %210, %c0_67, %c0_68] : memref<1x8x2x128xbf16, #tpu.memory_space<vmem>>, vector<1x1x2x128xbf16>
    %212 = vector.shape_cast %211 : vector<1x1x2x128xbf16> to vector<2x128xbf16>
    %213 = arith.extf %212 : vector<2x128xbf16> to vector<2x128xf32>
    %214 = vector.broadcast %8 : vector<1x128xf32> to vector<2x128xf32>
    %215 = arith.addf %213, %214 : vector<2x128xf32>
    %216 = arith.truncf %164 : vector<2x32xf32> to vector<2x32xbf16>
    %cst_69 = arith.constant dense<0.000000e+00> : vector<2x128xf32>
    %217 = tpu.matmul %216, %6, %cst_69 {dimension_numbers = #tpu.dot_dimension_numbers<[1], [0], [0], [1], [0, 0, 1, 1], [], []>} : vector<2x32xbf16>, vector<32x128xbf16>, vector<2x128xf32> -> vector<2x128xf32>
    %218 = arith.addf %215, %217 : vector<2x128xf32>
    %219 = vector.extract_strided_slice %218 {offsets = [0, 0], sizes = [2, 32], strides = [1, 1]} : vector<2x128xf32> to vector<2x32xf32>
    %220 = arith.negf %219 : vector<2x32xf32>
    %221 = math.exp %220 : vector<2x32xf32>
    %cst_70 = arith.constant 1.000000e+00 : f32
    %222 = vector.broadcast %cst_70 : f32 to vector<2x32xf32>
    %223 = arith.addf %222, %221 : vector<2x32xf32>
    %224 = arith.divf %222, %223 : vector<2x32xf32>
    %225 = vector.extract_strided_slice %218 {offsets = [0, 32], sizes = [2, 32], strides = [1, 1]} : vector<2x128xf32> to vector<2x32xf32>
    %226 = arith.negf %225 : vector<2x32xf32>
    %227 = math.exp %226 : vector<2x32xf32>
    %cst_71 = arith.constant 1.000000e+00 : f32
    %228 = vector.broadcast %cst_71 : f32 to vector<2x32xf32>
    %229 = arith.addf %228, %227 : vector<2x32xf32>
    %230 = arith.divf %228, %229 : vector<2x32xf32>
    %231 = vector.extract_strided_slice %218 {offsets = [0, 64], sizes = [2, 32], strides = [1, 1]} : vector<2x128xf32> to vector<2x32xf32>
    %232 = math.tanh %231 : vector<2x32xf32>
    %233 = vector.extract_strided_slice %218 {offsets = [0, 96], sizes = [2, 32], strides = [1, 1]} : vector<2x128xf32> to vector<2x32xf32>
    %234 = arith.negf %233 : vector<2x32xf32>
    %235 = math.exp %234 : vector<2x32xf32>
    %cst_72 = arith.constant 1.000000e+00 : f32
    %236 = vector.broadcast %cst_72 : f32 to vector<2x32xf32>
    %237 = arith.addf %236, %235 : vector<2x32xf32>
    %238 = arith.divf %236, %237 : vector<2x32xf32>
    %239 = arith.mulf %230, %162 : vector<2x32xf32>
    %240 = arith.mulf %224, %232 : vector<2x32xf32>
    %241 = arith.addf %239, %240 : vector<2x32xf32>
    %242 = math.tanh %241 : vector<2x32xf32>
    %243 = arith.mulf %238, %242 : vector<2x32xf32>
    %244 = arith.truncf %209 : vector<2x32xf32> to vector<2x32xbf16>
    %245 = arith.index_cast %c2_i32 : i32 to index
    %c0_73 = arith.constant 0 : index
    %c0_74 = arith.constant 0 : index
    %246 = vector.load %arg5[%245, %c0_73, %c0_74] : memref<8x2x32xbf16, #tpu.memory_space<vmem>>, vector<1x2x32xbf16>
    %247 = vector.shape_cast %246 : vector<1x2x32xbf16> to vector<2x32xbf16>
    %248 = vector.shape_cast %244 : vector<2x32xbf16> to vector<1x2x32xbf16>
    tpu.vector_store %arg5[%245, %c0_73, %c0_74], %248 {strides = array<i32>} : memref<8x2x32xbf16, #tpu.memory_space<vmem>>, vector<1x2x32xbf16>,
    %249 = arith.truncf %243 : vector<2x32xf32> to vector<2x32xbf16>
    %250 = arith.index_cast %175 : i32 to index
    %c0_75 = arith.constant 0 : index
    %c0_76 = arith.constant 0 : index
    %251 = vector.load %arg6[%250, %c0_75, %c0_76] : memref<8x2x32xbf16, #tpu.memory_space<vmem>>, vector<1x2x32xbf16>
    %252 = vector.shape_cast %251 : vector<1x2x32xbf16> to vector<2x32xbf16>
    %253 = vector.shape_cast %249 : vector<2x32xbf16> to vector<1x2x32xbf16>
    tpu.vector_store %arg6[%250, %c0_75, %c0_76], %253 {strides = array<i32>} : memref<8x2x32xbf16, #tpu.memory_space<vmem>>, vector<1x2x32xbf16>,
    %c3_i32 = arith.constant 3 : i32
    %c7_i32_77 = arith.constant 7 : i32
    %254 = arith.subi %c7_i32_77, %c3_i32 : i32
    %c0_78 = arith.constant 0 : index
    %255 = arith.index_cast %c3_i32 : i32 to index
    %c0_79 = arith.constant 0 : index
    %c0_80 = arith.constant 0 : index
    %256 = vector.load %arg1[%c0_78, %255, %c0_79, %c0_80] : memref<1x8x2x128xbf16, #tpu.memory_space<vmem>>, vector<1x1x2x128xbf16>
    %257 = vector.shape_cast %256 : vector<1x1x2x128xbf16> to vector<2x128xbf16>
    %258 = arith.extf %257 : vector<2x128xbf16> to vector<2x128xf32>
    %259 = vector.broadcast %7 : vector<1x128xf32> to vector<2x128xf32>
    %260 = arith.addf %258, %259 : vector<2x128xf32>
    %261 = arith.truncf %209 : vector<2x32xf32> to vector<2x32xbf16>
    %cst_81 = arith.constant dense<0.000000e+00> : vector<2x128xf32>
    %262 = tpu.matmul %261, %4, %cst_81 {dimension_numbers = #tpu.dot_dimension_numbers<[1], [0], [0], [1], [0, 0, 1, 1], [], []>} : vector<2x32xbf16>, vector<32x128xbf16>, vector<2x128xf32> -> vector<2x128xf32>
    %263 = arith.addf %260, %262 : vector<2x128xf32>
    %264 = vector.extract_strided_slice %263 {offsets = [0, 0], sizes = [2, 32], strides = [1, 1]} : vector<2x128xf32> to vector<2x32xf32>
    %265 = arith.negf %264 : vector<2x32xf32>
    %266 = math.exp %265 : vector<2x32xf32>
    %cst_82 = arith.constant 1.000000e+00 : f32
    %267 = vector.broadcast %cst_82 : f32 to vector<2x32xf32>
    %268 = arith.addf %267, %266 : vector<2x32xf32>
    %269 = arith.divf %267, %268 : vector<2x32xf32>
    %270 = vector.extract_strided_slice %263 {offsets = [0, 32], sizes = [2, 32], strides = [1, 1]} : vector<2x128xf32> to vector<2x32xf32>
    %271 = arith.negf %270 : vector<2x32xf32>
    %272 = math.exp %271 : vector<2x32xf32>
    %cst_83 = arith.constant 1.000000e+00 : f32
    %273 = vector.broadcast %cst_83 : f32 to vector<2x32xf32>
    %274 = arith.addf %273, %272 : vector<2x32xf32>
    %275 = arith.divf %273, %274 : vector<2x32xf32>
    %276 = vector.extract_strided_slice %263 {offsets = [0, 64], sizes = [2, 32], strides = [1, 1]} : vector<2x128xf32> to vector<2x32xf32>
    %277 = math.tanh %276 : vector<2x32xf32>
    %278 = vector.extract_strided_slice %263 {offsets = [0, 96], sizes = [2, 32], strides = [1, 1]} : vector<2x128xf32> to vector<2x32xf32>
    %279 = arith.negf %278 : vector<2x32xf32>
    %280 = math.exp %279 : vector<2x32xf32>
    %cst_84 = arith.constant 1.000000e+00 : f32
    %281 = vector.broadcast %cst_84 : f32 to vector<2x32xf32>
    %282 = arith.addf %281, %280 : vector<2x32xf32>
    %283 = arith.divf %281, %282 : vector<2x32xf32>
    %284 = arith.mulf %275, %207 : vector<2x32xf32>
    %285 = arith.mulf %269, %277 : vector<2x32xf32>
    %286 = arith.addf %284, %285 : vector<2x32xf32>
    %287 = math.tanh %286 : vector<2x32xf32>
    %288 = arith.mulf %283, %287 : vector<2x32xf32>
    %c0_85 = arith.constant 0 : index
    %289 = arith.index_cast %254 : i32 to index
    %c0_86 = arith.constant 0 : index
    %c0_87 = arith.constant 0 : index
    %290 = vector.load %arg2[%c0_85, %289, %c0_86, %c0_87] : memref<1x8x2x128xbf16, #tpu.memory_space<vmem>>, vector<1x1x2x128xbf16>
    %291 = vector.shape_cast %290 : vector<1x1x2x128xbf16> to vector<2x128xbf16>
    %292 = arith.extf %291 : vector<2x128xbf16> to vector<2x128xf32>
    %293 = vector.broadcast %8 : vector<1x128xf32> to vector<2x128xf32>
    %294 = arith.addf %292, %293 : vector<2x128xf32>
    %295 = arith.truncf %243 : vector<2x32xf32> to vector<2x32xbf16>
    %cst_88 = arith.constant dense<0.000000e+00> : vector<2x128xf32>
    %296 = tpu.matmul %295, %6, %cst_88 {dimension_numbers = #tpu.dot_dimension_numbers<[1], [0], [0], [1], [0, 0, 1, 1], [], []>} : vector<2x32xbf16>, vector<32x128xbf16>, vector<2x128xf32> -> vector<2x128xf32>
    %297 = arith.addf %294, %296 : vector<2x128xf32>
    %298 = vector.extract_strided_slice %297 {offsets = [0, 0], sizes = [2, 32], strides = [1, 1]} : vector<2x128xf32> to vector<2x32xf32>
    %299 = arith.negf %298 : vector<2x32xf32>
    %300 = math.exp %299 : vector<2x32xf32>
    %cst_89 = arith.constant 1.000000e+00 : f32
    %301 = vector.broadcast %cst_89 : f32 to vector<2x32xf32>
    %302 = arith.addf %301, %300 : vector<2x32xf32>
    %303 = arith.divf %301, %302 : vector<2x32xf32>
    %304 = vector.extract_strided_slice %297 {offsets = [0, 32], sizes = [2, 32], strides = [1, 1]} : vector<2x128xf32> to vector<2x32xf32>
    %305 = arith.negf %304 : vector<2x32xf32>
    %306 = math.exp %305 : vector<2x32xf32>
    %cst_90 = arith.constant 1.000000e+00 : f32
    %307 = vector.broadcast %cst_90 : f32 to vector<2x32xf32>
    %308 = arith.addf %307, %306 : vector<2x32xf32>
    %309 = arith.divf %307, %308 : vector<2x32xf32>
    %310 = vector.extract_strided_slice %297 {offsets = [0, 64], sizes = [2, 32], strides = [1, 1]} : vector<2x128xf32> to vector<2x32xf32>
    %311 = math.tanh %310 : vector<2x32xf32>
    %312 = vector.extract_strided_slice %297 {offsets = [0, 96], sizes = [2, 32], strides = [1, 1]} : vector<2x128xf32> to vector<2x32xf32>
    %313 = arith.negf %312 : vector<2x32xf32>
    %314 = math.exp %313 : vector<2x32xf32>
    %cst_91 = arith.constant 1.000000e+00 : f32
    %315 = vector.broadcast %cst_91 : f32 to vector<2x32xf32>
    %316 = arith.addf %315, %314 : vector<2x32xf32>
    %317 = arith.divf %315, %316 : vector<2x32xf32>
    %318 = arith.mulf %309, %241 : vector<2x32xf32>
    %319 = arith.mulf %303, %311 : vector<2x32xf32>
    %320 = arith.addf %318, %319 : vector<2x32xf32>
    %321 = math.tanh %320 : vector<2x32xf32>
    %322 = arith.mulf %317, %321 : vector<2x32xf32>
    %323 = arith.truncf %288 : vector<2x32xf32> to vector<2x32xbf16>
    %324 = arith.index_cast %c3_i32 : i32 to index
    %c0_92 = arith.constant 0 : index
    %c0_93 = arith.constant 0 : index
    %325 = vector.load %arg5[%324, %c0_92, %c0_93] : memref<8x2x32xbf16, #tpu.memory_space<vmem>>, vector<1x2x32xbf16>
    %326 = vector.shape_cast %325 : vector<1x2x32xbf16> to vector<2x32xbf16>
    %327 = vector.shape_cast %323 : vector<2x32xbf16> to vector<1x2x32xbf16>
    tpu.vector_store %arg5[%324, %c0_92, %c0_93], %327 {strides = array<i32>} : memref<8x2x32xbf16, #tpu.memory_space<vmem>>, vector<1x2x32xbf16>,
    %328 = arith.truncf %322 : vector<2x32xf32> to vector<2x32xbf16>
    %329 = arith.index_cast %254 : i32 to index
    %c0_94 = arith.constant 0 : index
    %c0_95 = arith.constant 0 : index
    %330 = vector.load %arg6[%329, %c0_94, %c0_95] : memref<8x2x32xbf16, #tpu.memory_space<vmem>>, vector<1x2x32xbf16>
    %331 = vector.shape_cast %330 : vector<1x2x32xbf16> to vector<2x32xbf16>
    %332 = vector.shape_cast %328 : vector<2x32xbf16> to vector<1x2x32xbf16>
    tpu.vector_store %arg6[%329, %c0_94, %c0_95], %332 {strides = array<i32>} : memref<8x2x32xbf16, #tpu.memory_space<vmem>>, vector<1x2x32xbf16>,
    %c4_i32 = arith.constant 4 : i32
    %c7_i32_96 = arith.constant 7 : i32
    %333 = arith.subi %c7_i32_96, %c4_i32 : i32
    %c0_97 = arith.constant 0 : index
    %334 = arith.index_cast %c4_i32 : i32 to index
    %c0_98 = arith.constant 0 : index
    %c0_99 = arith.constant 0 : index
    %335 = vector.load %arg1[%c0_97, %334, %c0_98, %c0_99] : memref<1x8x2x128xbf16, #tpu.memory_space<vmem>>, vector<1x1x2x128xbf16>
    %336 = vector.shape_cast %335 : vector<1x1x2x128xbf16> to vector<2x128xbf16>
    %337 = arith.extf %336 : vector<2x128xbf16> to vector<2x128xf32>
    %338 = vector.broadcast %7 : vector<1x128xf32> to vector<2x128xf32>
    %339 = arith.addf %337, %338 : vector<2x128xf32>
    %340 = arith.truncf %288 : vector<2x32xf32> to vector<2x32xbf16>
    %cst_100 = arith.constant dense<0.000000e+00> : vector<2x128xf32>
    %341 = tpu.matmul %340, %4, %cst_100 {dimension_numbers = #tpu.dot_dimension_numbers<[1], [0], [0], [1], [0, 0, 1, 1], [], []>} : vector<2x32xbf16>, vector<32x128xbf16>, vector<2x128xf32> -> vector<2x128xf32>
    %342 = arith.addf %339, %341 : vector<2x128xf32>
    %343 = vector.extract_strided_slice %342 {offsets = [0, 0], sizes = [2, 32], strides = [1, 1]} : vector<2x128xf32> to vector<2x32xf32>
    %344 = arith.negf %343 : vector<2x32xf32>
    %345 = math.exp %344 : vector<2x32xf32>
    %cst_101 = arith.constant 1.000000e+00 : f32
    %346 = vector.broadcast %cst_101 : f32 to vector<2x32xf32>
    %347 = arith.addf %346, %345 : vector<2x32xf32>
    %348 = arith.divf %346, %347 : vector<2x32xf32>
    %349 = vector.extract_strided_slice %342 {offsets = [0, 32], sizes = [2, 32], strides = [1, 1]} : vector<2x128xf32> to vector<2x32xf32>
    %350 = arith.negf %349 : vector<2x32xf32>
    %351 = math.exp %350 : vector<2x32xf32>
    %cst_102 = arith.constant 1.000000e+00 : f32
    %352 = vector.broadcast %cst_102 : f32 to vector<2x32xf32>
    %353 = arith.addf %352, %351 : vector<2x32xf32>
    %354 = arith.divf %352, %353 : vector<2x32xf32>
    %355 = vector.extract_strided_slice %342 {offsets = [0, 64], sizes = [2, 32], strides = [1, 1]} : vector<2x128xf32> to vector<2x32xf32>
    %356 = math.tanh %355 : vector<2x32xf32>
    %357 = vector.extract_strided_slice %342 {offsets = [0, 96], sizes = [2, 32], strides = [1, 1]} : vector<2x128xf32> to vector<2x32xf32>
    %358 = arith.negf %357 : vector<2x32xf32>
    %359 = math.exp %358 : vector<2x32xf32>
    %cst_103 = arith.constant 1.000000e+00 : f32
    %360 = vector.broadcast %cst_103 : f32 to vector<2x32xf32>
    %361 = arith.addf %360, %359 : vector<2x32xf32>
    %362 = arith.divf %360, %361 : vector<2x32xf32>
    %363 = arith.mulf %354, %286 : vector<2x32xf32>
    %364 = arith.mulf %348, %356 : vector<2x32xf32>
    %365 = arith.addf %363, %364 : vector<2x32xf32>
    %366 = math.tanh %365 : vector<2x32xf32>
    %367 = arith.mulf %362, %366 : vector<2x32xf32>
    %c0_104 = arith.constant 0 : index
    %368 = arith.index_cast %333 : i32 to index
    %c0_105 = arith.constant 0 : index
    %c0_106 = arith.constant 0 : index
    %369 = vector.load %arg2[%c0_104, %368, %c0_105, %c0_106] : memref<1x8x2x128xbf16, #tpu.memory_space<vmem>>, vector<1x1x2x128xbf16>
    %370 = vector.shape_cast %369 : vector<1x1x2x128xbf16> to vector<2x128xbf16>
    %371 = arith.extf %370 : vector<2x128xbf16> to vector<2x128xf32>
    %372 = vector.broadcast %8 : vector<1x128xf32> to vector<2x128xf32>
    %373 = arith.addf %371, %372 : vector<2x128xf32>
    %374 = arith.truncf %322 : vector<2x32xf32> to vector<2x32xbf16>
    %cst_107 = arith.constant dense<0.000000e+00> : vector<2x128xf32>
    %375 = tpu.matmul %374, %6, %cst_107 {dimension_numbers = #tpu.dot_dimension_numbers<[1], [0], [0], [1], [0, 0, 1, 1], [], []>} : vector<2x32xbf16>, vector<32x128xbf16>, vector<2x128xf32> -> vector<2x128xf32>
    %376 = arith.addf %373, %375 : vector<2x128xf32>
    %377 = vector.extract_strided_slice %376 {offsets = [0, 0], sizes = [2, 32], strides = [1, 1]} : vector<2x128xf32> to vector<2x32xf32>
    %378 = arith.negf %377 : vector<2x32xf32>
    %379 = math.exp %378 : vector<2x32xf32>
    %cst_108 = arith.constant 1.000000e+00 : f32
    %380 = vector.broadcast %cst_108 : f32 to vector<2x32xf32>
    %381 = arith.addf %380, %379 : vector<2x32xf32>
    %382 = arith.divf %380, %381 : vector<2x32xf32>
    %383 = vector.extract_strided_slice %376 {offsets = [0, 32], sizes = [2, 32], strides = [1, 1]} : vector<2x128xf32> to vector<2x32xf32>
    %384 = arith.negf %383 : vector<2x32xf32>
    %385 = math.exp %384 : vector<2x32xf32>
    %cst_109 = arith.constant 1.000000e+00 : f32
    %386 = vector.broadcast %cst_109 : f32 to vector<2x32xf32>
    %387 = arith.addf %386, %385 : vector<2x32xf32>
    %388 = arith.divf %386, %387 : vector<2x32xf32>
    %389 = vector.extract_strided_slice %376 {offsets = [0, 64], sizes = [2, 32], strides = [1, 1]} : vector<2x128xf32> to vector<2x32xf32>
    %390 = math.tanh %389 : vector<2x32xf32>
    %391 = vector.extract_strided_slice %376 {offsets = [0, 96], sizes = [2, 32], strides = [1, 1]} : vector<2x128xf32> to vector<2x32xf32>
    %392 = arith.negf %391 : vector<2x32xf32>
    %393 = math.exp %392 : vector<2x32xf32>
    %cst_110 = arith.constant 1.000000e+00 : f32
    %394 = vector.broadcast %cst_110 : f32 to vector<2x32xf32>
    %395 = arith.addf %394, %393 : vector<2x32xf32>
    %396 = arith.divf %394, %395 : vector<2x32xf32>
    %397 = arith.mulf %388, %320 : vector<2x32xf32>
    %398 = arith.mulf %382, %390 : vector<2x32xf32>
    %399 = arith.addf %397, %398 : vector<2x32xf32>
    %400 = math.tanh %399 : vector<2x32xf32>
    %401 = arith.mulf %396, %400 : vector<2x32xf32>
    %402 = arith.truncf %367 : vector<2x32xf32> to vector<2x32xbf16>
    %403 = arith.index_cast %c4_i32 : i32 to index
    %c0_111 = arith.constant 0 : index
    %c0_112 = arith.constant 0 : index
    %404 = vector.load %arg5[%403, %c0_111, %c0_112] : memref<8x2x32xbf16, #tpu.memory_space<vmem>>, vector<1x2x32xbf16>
    %405 = vector.shape_cast %404 : vector<1x2x32xbf16> to vector<2x32xbf16>
    %406 = vector.shape_cast %402 : vector<2x32xbf16> to vector<1x2x32xbf16>
    tpu.vector_store %arg5[%403, %c0_111, %c0_112], %406 {strides = array<i32>} : memref<8x2x32xbf16, #tpu.memory_space<vmem>>, vector<1x2x32xbf16>,
    %407 = arith.truncf %401 : vector<2x32xf32> to vector<2x32xbf16>
    %408 = arith.index_cast %333 : i32 to index
    %c0_113 = arith.constant 0 : index
    %c0_114 = arith.constant 0 : index
    %409 = vector.load %arg6[%408, %c0_113, %c0_114] : memref<8x2x32xbf16, #tpu.memory_space<vmem>>, vector<1x2x32xbf16>
    %410 = vector.shape_cast %409 : vector<1x2x32xbf16> to vector<2x32xbf16>
    %411 = vector.shape_cast %407 : vector<2x32xbf16> to vector<1x2x32xbf16>
    tpu.vector_store %arg6[%408, %c0_113, %c0_114], %411 {strides = array<i32>} : memref<8x2x32xbf16, #tpu.memory_space<vmem>>, vector<1x2x32xbf16>,
    %c5_i32 = arith.constant 5 : i32
    %c7_i32_115 = arith.constant 7 : i32
    %412 = arith.subi %c7_i32_115, %c5_i32 : i32
    %c0_116 = arith.constant 0 : index
    %413 = arith.index_cast %c5_i32 : i32 to index
    %c0_117 = arith.constant 0 : index
    %c0_118 = arith.constant 0 : index
    %414 = vector.load %arg1[%c0_116, %413, %c0_117, %c0_118] : memref<1x8x2x128xbf16, #tpu.memory_space<vmem>>, vector<1x1x2x128xbf16>
    %415 = vector.shape_cast %414 : vector<1x1x2x128xbf16> to vector<2x128xbf16>
    %416 = arith.extf %415 : vector<2x128xbf16> to vector<2x128xf32>
    %417 = vector.broadcast %7 : vector<1x128xf32> to vector<2x128xf32>
    %418 = arith.addf %416, %417 : vector<2x128xf32>
    %419 = arith.truncf %367 : vector<2x32xf32> to vector<2x32xbf16>
    %cst_119 = arith.constant dense<0.000000e+00> : vector<2x128xf32>
    %420 = tpu.matmul %419, %4, %cst_119 {dimension_numbers = #tpu.dot_dimension_numbers<[1], [0], [0], [1], [0, 0, 1, 1], [], []>} : vector<2x32xbf16>, vector<32x128xbf16>, vector<2x128xf32> -> vector<2x128xf32>
    %421 = arith.addf %418, %420 : vector<2x128xf32>
    %422 = vector.extract_strided_slice %421 {offsets = [0, 0], sizes = [2, 32], strides = [1, 1]} : vector<2x128xf32> to vector<2x32xf32>
    %423 = arith.negf %422 : vector<2x32xf32>
    %424 = math.exp %423 : vector<2x32xf32>
    %cst_120 = arith.constant 1.000000e+00 : f32
    %425 = vector.broadcast %cst_120 : f32 to vector<2x32xf32>
    %426 = arith.addf %425, %424 : vector<2x32xf32>
    %427 = arith.divf %425, %426 : vector<2x32xf32>
    %428 = vector.extract_strided_slice %421 {offsets = [0, 32], sizes = [2, 32], strides = [1, 1]} : vector<2x128xf32> to vector<2x32xf32>
    %429 = arith.negf %428 : vector<2x32xf32>
    %430 = math.exp %429 : vector<2x32xf32>
    %cst_121 = arith.constant 1.000000e+00 : f32
    %431 = vector.broadcast %cst_121 : f32 to vector<2x32xf32>
    %432 = arith.addf %431, %430 : vector<2x32xf32>
    %433 = arith.divf %431, %432 : vector<2x32xf32>
    %434 = vector.extract_strided_slice %421 {offsets = [0, 64], sizes = [2, 32], strides = [1, 1]} : vector<2x128xf32> to vector<2x32xf32>
    %435 = math.tanh %434 : vector<2x32xf32>
    %436 = vector.extract_strided_slice %421 {offsets = [0, 96], sizes = [2, 32], strides = [1, 1]} : vector<2x128xf32> to vector<2x32xf32>
    %437 = arith.negf %436 : vector<2x32xf32>
    %438 = math.exp %437 : vector<2x32xf32>
    %cst_122 = arith.constant 1.000000e+00 : f32
    %439 = vector.broadcast %cst_122 : f32 to vector<2x32xf32>
    %440 = arith.addf %439, %438 : vector<2x32xf32>
    %441 = arith.divf %439, %440 : vector<2x32xf32>
    %442 = arith.mulf %433, %365 : vector<2x32xf32>
    %443 = arith.mulf %427, %435 : vector<2x32xf32>
    %444 = arith.addf %442, %443 : vector<2x32xf32>
    %445 = math.tanh %444 : vector<2x32xf32>
    %446 = arith.mulf %441, %445 : vector<2x32xf32>
    %c0_123 = arith.constant 0 : index
    %447 = arith.index_cast %412 : i32 to index
    %c0_124 = arith.constant 0 : index
    %c0_125 = arith.constant 0 : index
    %448 = vector.load %arg2[%c0_123, %447, %c0_124, %c0_125] : memref<1x8x2x128xbf16, #tpu.memory_space<vmem>>, vector<1x1x2x128xbf16>
    %449 = vector.shape_cast %448 : vector<1x1x2x128xbf16> to vector<2x128xbf16>
    %450 = arith.extf %449 : vector<2x128xbf16> to vector<2x128xf32>
    %451 = vector.broadcast %8 : vector<1x128xf32> to vector<2x128xf32>
    %452 = arith.addf %450, %451 : vector<2x128xf32>
    %453 = arith.truncf %401 : vector<2x32xf32> to vector<2x32xbf16>
    %cst_126 = arith.constant dense<0.000000e+00> : vector<2x128xf32>
    %454 = tpu.matmul %453, %6, %cst_126 {dimension_numbers = #tpu.dot_dimension_numbers<[1], [0], [0], [1], [0, 0, 1, 1], [], []>} : vector<2x32xbf16>, vector<32x128xbf16>, vector<2x128xf32> -> vector<2x128xf32>
    %455 = arith.addf %452, %454 : vector<2x128xf32>
    %456 = vector.extract_strided_slice %455 {offsets = [0, 0], sizes = [2, 32], strides = [1, 1]} : vector<2x128xf32> to vector<2x32xf32>
    %457 = arith.negf %456 : vector<2x32xf32>
    %458 = math.exp %457 : vector<2x32xf32>
    %cst_127 = arith.constant 1.000000e+00 : f32
    %459 = vector.broadcast %cst_127 : f32 to vector<2x32xf32>
    %460 = arith.addf %459, %458 : vector<2x32xf32>
    %461 = arith.divf %459, %460 : vector<2x32xf32>
    %462 = vector.extract_strided_slice %455 {offsets = [0, 32], sizes = [2, 32], strides = [1, 1]} : vector<2x128xf32> to vector<2x32xf32>
    %463 = arith.negf %462 : vector<2x32xf32>
    %464 = math.exp %463 : vector<2x32xf32>
    %cst_128 = arith.constant 1.000000e+00 : f32
    %465 = vector.broadcast %cst_128 : f32 to vector<2x32xf32>
    %466 = arith.addf %465, %464 : vector<2x32xf32>
    %467 = arith.divf %465, %466 : vector<2x32xf32>
    %468 = vector.extract_strided_slice %455 {offsets = [0, 64], sizes = [2, 32], strides = [1, 1]} : vector<2x128xf32> to vector<2x32xf32>
    %469 = math.tanh %468 : vector<2x32xf32>
    %470 = vector.extract_strided_slice %455 {offsets = [0, 96], sizes = [2, 32], strides = [1, 1]} : vector<2x128xf32> to vector<2x32xf32>
    %471 = arith.negf %470 : vector<2x32xf32>
    %472 = math.exp %471 : vector<2x32xf32>
    %cst_129 = arith.constant 1.000000e+00 : f32
    %473 = vector.broadcast %cst_129 : f32 to vector<2x32xf32>
    %474 = arith.addf %473, %472 : vector<2x32xf32>
    %475 = arith.divf %473, %474 : vector<2x32xf32>
    %476 = arith.mulf %467, %399 : vector<2x32xf32>
    %477 = arith.mulf %461, %469 : vector<2x32xf32>
    %478 = arith.addf %476, %477 : vector<2x32xf32>
    %479 = math.tanh %478 : vector<2x32xf32>
    %480 = arith.mulf %475, %479 : vector<2x32xf32>
    %481 = arith.truncf %446 : vector<2x32xf32> to vector<2x32xbf16>
    %482 = arith.index_cast %c5_i32 : i32 to index
    %c0_130 = arith.constant 0 : index
    %c0_131 = arith.constant 0 : index
    %483 = vector.load %arg5[%482, %c0_130, %c0_131] : memref<8x2x32xbf16, #tpu.memory_space<vmem>>, vector<1x2x32xbf16>
    %484 = vector.shape_cast %483 : vector<1x2x32xbf16> to vector<2x32xbf16>
    %485 = vector.shape_cast %481 : vector<2x32xbf16> to vector<1x2x32xbf16>
    tpu.vector_store %arg5[%482, %c0_130, %c0_131], %485 {strides = array<i32>} : memref<8x2x32xbf16, #tpu.memory_space<vmem>>, vector<1x2x32xbf16>,
    %486 = arith.truncf %480 : vector<2x32xf32> to vector<2x32xbf16>
    %487 = arith.index_cast %412 : i32 to index
    %c0_132 = arith.constant 0 : index
    %c0_133 = arith.constant 0 : index
    %488 = vector.load %arg6[%487, %c0_132, %c0_133] : memref<8x2x32xbf16, #tpu.memory_space<vmem>>, vector<1x2x32xbf16>
    %489 = vector.shape_cast %488 : vector<1x2x32xbf16> to vector<2x32xbf16>
    %490 = vector.shape_cast %486 : vector<2x32xbf16> to vector<1x2x32xbf16>
    tpu.vector_store %arg6[%487, %c0_132, %c0_133], %490 {strides = array<i32>} : memref<8x2x32xbf16, #tpu.memory_space<vmem>>, vector<1x2x32xbf16>,
    %c6_i32 = arith.constant 6 : i32
    %c7_i32_134 = arith.constant 7 : i32
    %491 = arith.subi %c7_i32_134, %c6_i32 : i32
    %c0_135 = arith.constant 0 : index
    %492 = arith.index_cast %c6_i32 : i32 to index
    %c0_136 = arith.constant 0 : index
    %c0_137 = arith.constant 0 : index
    %493 = vector.load %arg1[%c0_135, %492, %c0_136, %c0_137] : memref<1x8x2x128xbf16, #tpu.memory_space<vmem>>, vector<1x1x2x128xbf16>
    %494 = vector.shape_cast %493 : vector<1x1x2x128xbf16> to vector<2x128xbf16>
    %495 = arith.extf %494 : vector<2x128xbf16> to vector<2x128xf32>
    %496 = vector.broadcast %7 : vector<1x128xf32> to vector<2x128xf32>
    %497 = arith.addf %495, %496 : vector<2x128xf32>
    %498 = arith.truncf %446 : vector<2x32xf32> to vector<2x32xbf16>
    %cst_138 = arith.constant dense<0.000000e+00> : vector<2x128xf32>
    %499 = tpu.matmul %498, %4, %cst_138 {dimension_numbers = #tpu.dot_dimension_numbers<[1], [0], [0], [1], [0, 0, 1, 1], [], []>} : vector<2x32xbf16>, vector<32x128xbf16>, vector<2x128xf32> -> vector<2x128xf32>
    %500 = arith.addf %497, %499 : vector<2x128xf32>
    %501 = vector.extract_strided_slice %500 {offsets = [0, 0], sizes = [2, 32], strides = [1, 1]} : vector<2x128xf32> to vector<2x32xf32>
    %502 = arith.negf %501 : vector<2x32xf32>
    %503 = math.exp %502 : vector<2x32xf32>
    %cst_139 = arith.constant 1.000000e+00 : f32
    %504 = vector.broadcast %cst_139 : f32 to vector<2x32xf32>
    %505 = arith.addf %504, %503 : vector<2x32xf32>
    %506 = arith.divf %504, %505 : vector<2x32xf32>
    %507 = vector.extract_strided_slice %500 {offsets = [0, 32], sizes = [2, 32], strides = [1, 1]} : vector<2x128xf32> to vector<2x32xf32>
    %508 = arith.negf %507 : vector<2x32xf32>
    %509 = math.exp %508 : vector<2x32xf32>
    %cst_140 = arith.constant 1.000000e+00 : f32
    %510 = vector.broadcast %cst_140 : f32 to vector<2x32xf32>
    %511 = arith.addf %510, %509 : vector<2x32xf32>
    %512 = arith.divf %510, %511 : vector<2x32xf32>
    %513 = vector.extract_strided_slice %500 {offsets = [0, 64], sizes = [2, 32], strides = [1, 1]} : vector<2x128xf32> to vector<2x32xf32>
    %514 = math.tanh %513 : vector<2x32xf32>
    %515 = vector.extract_strided_slice %500 {offsets = [0, 96], sizes = [2, 32], strides = [1, 1]} : vector<2x128xf32> to vector<2x32xf32>
    %516 = arith.negf %515 : vector<2x32xf32>
    %517 = math.exp %516 : vector<2x32xf32>
    %cst_141 = arith.constant 1.000000e+00 : f32
    %518 = vector.broadcast %cst_141 : f32 to vector<2x32xf32>
    %519 = arith.addf %518, %517 : vector<2x32xf32>
    %520 = arith.divf %518, %519 : vector<2x32xf32>
    %521 = arith.mulf %512, %444 : vector<2x32xf32>
    %522 = arith.mulf %506, %514 : vector<2x32xf32>
    %523 = arith.addf %521, %522 : vector<2x32xf32>
    %524 = math.tanh %523 : vector<2x32xf32>
    %525 = arith.mulf %520, %524 : vector<2x32xf32>
    %c0_142 = arith.constant 0 : index
    %526 = arith.index_cast %491 : i32 to index
    %c0_143 = arith.constant 0 : index
    %c0_144 = arith.constant 0 : index
    %527 = vector.load %arg2[%c0_142, %526, %c0_143, %c0_144] : memref<1x8x2x128xbf16, #tpu.memory_space<vmem>>, vector<1x1x2x128xbf16>
    %528 = vector.shape_cast %527 : vector<1x1x2x128xbf16> to vector<2x128xbf16>
    %529 = arith.extf %528 : vector<2x128xbf16> to vector<2x128xf32>
    %530 = vector.broadcast %8 : vector<1x128xf32> to vector<2x128xf32>
    %531 = arith.addf %529, %530 : vector<2x128xf32>
    %532 = arith.truncf %480 : vector<2x32xf32> to vector<2x32xbf16>
    %cst_145 = arith.constant dense<0.000000e+00> : vector<2x128xf32>
    %533 = tpu.matmul %532, %6, %cst_145 {dimension_numbers = #tpu.dot_dimension_numbers<[1], [0], [0], [1], [0, 0, 1, 1], [], []>} : vector<2x32xbf16>, vector<32x128xbf16>, vector<2x128xf32> -> vector<2x128xf32>
    %534 = arith.addf %531, %533 : vector<2x128xf32>
    %535 = vector.extract_strided_slice %534 {offsets = [0, 0], sizes = [2, 32], strides = [1, 1]} : vector<2x128xf32> to vector<2x32xf32>
    %536 = arith.negf %535 : vector<2x32xf32>
    %537 = math.exp %536 : vector<2x32xf32>
    %cst_146 = arith.constant 1.000000e+00 : f32
    %538 = vector.broadcast %cst_146 : f32 to vector<2x32xf32>
    %539 = arith.addf %538, %537 : vector<2x32xf32>
    %540 = arith.divf %538, %539 : vector<2x32xf32>
    %541 = vector.extract_strided_slice %534 {offsets = [0, 32], sizes = [2, 32], strides = [1, 1]} : vector<2x128xf32> to vector<2x32xf32>
    %542 = arith.negf %541 : vector<2x32xf32>
    %543 = math.exp %542 : vector<2x32xf32>
    %cst_147 = arith.constant 1.000000e+00 : f32
    %544 = vector.broadcast %cst_147 : f32 to vector<2x32xf32>
    %545 = arith.addf %544, %543 : vector<2x32xf32>
    %546 = arith.divf %544, %545 : vector<2x32xf32>
    %547 = vector.extract_strided_slice %534 {offsets = [0, 64], sizes = [2, 32], strides = [1, 1]} : vector<2x128xf32> to vector<2x32xf32>
    %548 = math.tanh %547 : vector<2x32xf32>
    %549 = vector.extract_strided_slice %534 {offsets = [0, 96], sizes = [2, 32], strides = [1, 1]} : vector<2x128xf32> to vector<2x32xf32>
    %550 = arith.negf %549 : vector<2x32xf32>
    %551 = math.exp %550 : vector<2x32xf32>
    %cst_148 = arith.constant 1.000000e+00 : f32
    %552 = vector.broadcast %cst_148 : f32 to vector<2x32xf32>
    %553 = arith.addf %552, %551 : vector<2x32xf32>
    %554 = arith.divf %552, %553 : vector<2x32xf32>
    %555 = arith.mulf %546, %478 : vector<2x32xf32>
    %556 = arith.mulf %540, %548 : vector<2x32xf32>
    %557 = arith.addf %555, %556 : vector<2x32xf32>
    %558 = math.tanh %557 : vector<2x32xf32>
    %559 = arith.mulf %554, %558 : vector<2x32xf32>
    %560 = arith.truncf %525 : vector<2x32xf32> to vector<2x32xbf16>
    %561 = arith.index_cast %c6_i32 : i32 to index
    %c0_149 = arith.constant 0 : index
    %c0_150 = arith.constant 0 : index
    %562 = vector.load %arg5[%561, %c0_149, %c0_150] : memref<8x2x32xbf16, #tpu.memory_space<vmem>>, vector<1x2x32xbf16>
    %563 = vector.shape_cast %562 : vector<1x2x32xbf16> to vector<2x32xbf16>
    %564 = vector.shape_cast %560 : vector<2x32xbf16> to vector<1x2x32xbf16>
    tpu.vector_store %arg5[%561, %c0_149, %c0_150], %564 {strides = array<i32>} : memref<8x2x32xbf16, #tpu.memory_space<vmem>>, vector<1x2x32xbf16>,
    %565 = arith.truncf %559 : vector<2x32xf32> to vector<2x32xbf16>
    %566 = arith.index_cast %491 : i32 to index
    %c0_151 = arith.constant 0 : index
    %c0_152 = arith.constant 0 : index
    %567 = vector.load %arg6[%566, %c0_151, %c0_152] : memref<8x2x32xbf16, #tpu.memory_space<vmem>>, vector<1x2x32xbf16>
    %568 = vector.shape_cast %567 : vector<1x2x32xbf16> to vector<2x32xbf16>
    %569 = vector.shape_cast %565 : vector<2x32xbf16> to vector<1x2x32xbf16>
    tpu.vector_store %arg6[%566, %c0_151, %c0_152], %569 {strides = array<i32>} : memref<8x2x32xbf16, #tpu.memory_space<vmem>>, vector<1x2x32xbf16>,
    %c7_i32_153 = arith.constant 7 : i32
    %c7_i32_154 = arith.constant 7 : i32
    %570 = arith.subi %c7_i32_154, %c7_i32_153 : i32
    %c0_155 = arith.constant 0 : index
    %571 = arith.index_cast %c7_i32_153 : i32 to index
    %c0_156 = arith.constant 0 : index
    %c0_157 = arith.constant 0 : index
    %572 = vector.load %arg1[%c0_155, %571, %c0_156, %c0_157] : memref<1x8x2x128xbf16, #tpu.memory_space<vmem>>, vector<1x1x2x128xbf16>
    %573 = vector.shape_cast %572 : vector<1x1x2x128xbf16> to vector<2x128xbf16>
    %574 = arith.extf %573 : vector<2x128xbf16> to vector<2x128xf32>
    %575 = vector.broadcast %7 : vector<1x128xf32> to vector<2x128xf32>
    %576 = arith.addf %574, %575 : vector<2x128xf32>
    %577 = arith.truncf %525 : vector<2x32xf32> to vector<2x32xbf16>
    %cst_158 = arith.constant dense<0.000000e+00> : vector<2x128xf32>
    %578 = tpu.matmul %577, %4, %cst_158 {dimension_numbers = #tpu.dot_dimension_numbers<[1], [0], [0], [1], [0, 0, 1, 1], [], []>} : vector<2x32xbf16>, vector<32x128xbf16>, vector<2x128xf32> -> vector<2x128xf32>
    %579 = arith.addf %576, %578 : vector<2x128xf32>
    %580 = vector.extract_strided_slice %579 {offsets = [0, 0], sizes = [2, 32], strides = [1, 1]} : vector<2x128xf32> to vector<2x32xf32>
    %581 = arith.negf %580 : vector<2x32xf32>
    %582 = math.exp %581 : vector<2x32xf32>
    %cst_159 = arith.constant 1.000000e+00 : f32
    %583 = vector.broadcast %cst_159 : f32 to vector<2x32xf32>
    %584 = arith.addf %583, %582 : vector<2x32xf32>
    %585 = arith.divf %583, %584 : vector<2x32xf32>
    %586 = vector.extract_strided_slice %579 {offsets = [0, 32], sizes = [2, 32], strides = [1, 1]} : vector<2x128xf32> to vector<2x32xf32>
    %587 = arith.negf %586 : vector<2x32xf32>
    %588 = math.exp %587 : vector<2x32xf32>
    %cst_160 = arith.constant 1.000000e+00 : f32
    %589 = vector.broadcast %cst_160 : f32 to vector<2x32xf32>
    %590 = arith.addf %589, %588 : vector<2x32xf32>
    %591 = arith.divf %589, %590 : vector<2x32xf32>
    %592 = vector.extract_strided_slice %579 {offsets = [0, 64], sizes = [2, 32], strides = [1, 1]} : vector<2x128xf32> to vector<2x32xf32>
    %593 = math.tanh %592 : vector<2x32xf32>
    %594 = vector.extract_strided_slice %579 {offsets = [0, 96], sizes = [2, 32], strides = [1, 1]} : vector<2x128xf32> to vector<2x32xf32>
    %595 = arith.negf %594 : vector<2x32xf32>
    %596 = math.exp %595 : vector<2x32xf32>
    %cst_161 = arith.constant 1.000000e+00 : f32
    %597 = vector.broadcast %cst_161 : f32 to vector<2x32xf32>
    %598 = arith.addf %597, %596 : vector<2x32xf32>
    %599 = arith.divf %597, %598 : vector<2x32xf32>
    %600 = arith.mulf %591, %523 : vector<2x32xf32>
    %601 = arith.mulf %585, %593 : vector<2x32xf32>
    %602 = arith.addf %600, %601 : vector<2x32xf32>
    %603 = math.tanh %602 : vector<2x32xf32>
    %604 = arith.mulf %599, %603 : vector<2x32xf32>
    %c0_162 = arith.constant 0 : index
    %605 = arith.index_cast %570 : i32 to index
    %c0_163 = arith.constant 0 : index
    %c0_164 = arith.constant 0 : index
    %606 = vector.load %arg2[%c0_162, %605, %c0_163, %c0_164] : memref<1x8x2x128xbf16, #tpu.memory_space<vmem>>, vector<1x1x2x128xbf16>
    %607 = vector.shape_cast %606 : vector<1x1x2x128xbf16> to vector<2x128xbf16>
    %608 = arith.extf %607 : vector<2x128xbf16> to vector<2x128xf32>
    %609 = vector.broadcast %8 : vector<1x128xf32> to vector<2x128xf32>
    %610 = arith.addf %608, %609 : vector<2x128xf32>
    %611 = arith.truncf %559 : vector<2x32xf32> to vector<2x32xbf16>
    %cst_165 = arith.constant dense<0.000000e+00> : vector<2x128xf32>
    %612 = tpu.matmul %611, %6, %cst_165 {dimension_numbers = #tpu.dot_dimension_numbers<[1], [0], [0], [1], [0, 0, 1, 1], [], []>} : vector<2x32xbf16>, vector<32x128xbf16>, vector<2x128xf32> -> vector<2x128xf32>
    %613 = arith.addf %610, %612 : vector<2x128xf32>
    %614 = vector.extract_strided_slice %613 {offsets = [0, 0], sizes = [2, 32], strides = [1, 1]} : vector<2x128xf32> to vector<2x32xf32>
    %615 = arith.negf %614 : vector<2x32xf32>
    %616 = math.exp %615 : vector<2x32xf32>
    %cst_166 = arith.constant 1.000000e+00 : f32
    %617 = vector.broadcast %cst_166 : f32 to vector<2x32xf32>
    %618 = arith.addf %617, %616 : vector<2x32xf32>
    %619 = arith.divf %617, %618 : vector<2x32xf32>
    %620 = vector.extract_strided_slice %613 {offsets = [0, 32], sizes = [2, 32], strides = [1, 1]} : vector<2x128xf32> to vector<2x32xf32>
    %621 = arith.negf %620 : vector<2x32xf32>
    %622 = math.exp %621 : vector<2x32xf32>
    %cst_167 = arith.constant 1.000000e+00 : f32
    %623 = vector.broadcast %cst_167 : f32 to vector<2x32xf32>
    %624 = arith.addf %623, %622 : vector<2x32xf32>
    %625 = arith.divf %623, %624 : vector<2x32xf32>
    %626 = vector.extract_strided_slice %613 {offsets = [0, 64], sizes = [2, 32], strides = [1, 1]} : vector<2x128xf32> to vector<2x32xf32>
    %627 = math.tanh %626 : vector<2x32xf32>
    %628 = vector.extract_strided_slice %613 {offsets = [0, 96], sizes = [2, 32], strides = [1, 1]} : vector<2x128xf32> to vector<2x32xf32>
    %629 = arith.negf %628 : vector<2x32xf32>
    %630 = math.exp %629 : vector<2x32xf32>
    %cst_168 = arith.constant 1.000000e+00 : f32
    %631 = vector.broadcast %cst_168 : f32 to vector<2x32xf32>
    %632 = arith.addf %631, %630 : vector<2x32xf32>
    %633 = arith.divf %631, %632 : vector<2x32xf32>
    %634 = arith.mulf %625, %557 : vector<2x32xf32>
    %635 = arith.mulf %619, %627 : vector<2x32xf32>
    %636 = arith.addf %634, %635 : vector<2x32xf32>
    %637 = math.tanh %636 : vector<2x32xf32>
    %638 = arith.mulf %633, %637 : vector<2x32xf32>
    %639 = arith.truncf %604 : vector<2x32xf32> to vector<2x32xbf16>
    %640 = arith.index_cast %c7_i32_153 : i32 to index
    %c0_169 = arith.constant 0 : index
    %c0_170 = arith.constant 0 : index
    %641 = vector.load %arg5[%640, %c0_169, %c0_170] : memref<8x2x32xbf16, #tpu.memory_space<vmem>>, vector<1x2x32xbf16>
    %642 = vector.shape_cast %641 : vector<1x2x32xbf16> to vector<2x32xbf16>
    %643 = vector.shape_cast %639 : vector<2x32xbf16> to vector<1x2x32xbf16>
    tpu.vector_store %arg5[%640, %c0_169, %c0_170], %643 {strides = array<i32>} : memref<8x2x32xbf16, #tpu.memory_space<vmem>>, vector<1x2x32xbf16>,
    %644 = arith.truncf %638 : vector<2x32xf32> to vector<2x32xbf16>
    %645 = arith.index_cast %570 : i32 to index
    %c0_171 = arith.constant 0 : index
    %c0_172 = arith.constant 0 : index
    %646 = vector.load %arg6[%645, %c0_171, %c0_172] : memref<8x2x32xbf16, #tpu.memory_space<vmem>>, vector<1x2x32xbf16>
    %647 = vector.shape_cast %646 : vector<1x2x32xbf16> to vector<2x32xbf16>
    %648 = vector.shape_cast %644 : vector<2x32xbf16> to vector<1x2x32xbf16>
    tpu.vector_store %arg6[%645, %c0_171, %c0_172], %648 {strides = array<i32>} : memref<8x2x32xbf16, #tpu.memory_space<vmem>>, vector<1x2x32xbf16>,
    %c8_i32 = arith.constant 8 : i32
    %c0_173 = arith.constant 0 : index
    %c0_174 = arith.constant 0 : index
    %c0_175 = arith.constant 0 : index
    %649 = vector.load %arg9[%c0_173, %c0_174, %c0_175] : memref<2x2x32xf32, #tpu.memory_space<vmem>>, vector<1x2x32xf32>
    %650 = vector.shape_cast %649 : vector<1x2x32xf32> to vector<2x32xf32>
    %651 = vector.shape_cast %604 : vector<2x32xf32> to vector<1x2x32xf32>
    tpu.vector_store %arg9[%c0_173, %c0_174, %c0_175], %651 {strides = array<i32>} : memref<2x2x32xf32, #tpu.memory_space<vmem>>, vector<1x2x32xf32>,
    %c0_176 = arith.constant 0 : index
    %c0_177 = arith.constant 0 : index
    %c0_178 = arith.constant 0 : index
    %652 = vector.load %arg10[%c0_176, %c0_177, %c0_178] : memref<2x2x32xf32, #tpu.memory_space<vmem>>, vector<1x2x32xf32>
    %653 = vector.shape_cast %652 : vector<1x2x32xf32> to vector<2x32xf32>
    %654 = vector.shape_cast %602 : vector<2x32xf32> to vector<1x2x32xf32>
    tpu.vector_store %arg10[%c0_176, %c0_177, %c0_178], %654 {strides = array<i32>} : memref<2x2x32xf32, #tpu.memory_space<vmem>>, vector<1x2x32xf32>,
    %c1_179 = arith.constant 1 : index
    %c0_180 = arith.constant 0 : index
    %c0_181 = arith.constant 0 : index
    %655 = vector.load %arg9[%c1_179, %c0_180, %c0_181] : memref<2x2x32xf32, #tpu.memory_space<vmem>>, vector<1x2x32xf32>
    %656 = vector.shape_cast %655 : vector<1x2x32xf32> to vector<2x32xf32>
    %657 = vector.shape_cast %638 : vector<2x32xf32> to vector<1x2x32xf32>
    tpu.vector_store %arg9[%c1_179, %c0_180, %c0_181], %657 {strides = array<i32>} : memref<2x2x32xf32, #tpu.memory_space<vmem>>, vector<1x2x32xf32>,
    %c1_182 = arith.constant 1 : index
    %c0_183 = arith.constant 0 : index
    %c0_184 = arith.constant 0 : index
    %658 = vector.load %arg10[%c1_182, %c0_183, %c0_184] : memref<2x2x32xf32, #tpu.memory_space<vmem>>, vector<1x2x32xf32>
    %659 = vector.shape_cast %658 : vector<1x2x32xf32> to vector<2x32xf32>
    %660 = vector.shape_cast %636 : vector<2x32xf32> to vector<1x2x32xf32>
    tpu.vector_store %arg10[%c1_182, %c0_183, %c0_184], %660 {strides = array<i32>} : memref<2x2x32xf32, #tpu.memory_space<vmem>>, vector<1x2x32xf32>,
    %c0_i32_185 = arith.constant 0 : i32
    %661 = arith.cmpi eq, %arg0, %c0_i32_185 : i32
    %662 = arith.extui %661 : i1 to i32
    %c0_i32_186 = arith.constant 0 : i32
    %663 = arith.cmpi ne, %662, %c0_i32_186 : i32
    scf.if %663 {
      %c0_187 = arith.constant 0 : index
      %c0_188 = arith.constant 0 : index
      %c0_189 = arith.constant 0 : index
      %664 = vector.load %arg7[%c0_187, %c0_188, %c0_189] : memref<2x2x32xf32, #tpu.memory_space<vmem>>, vector<1x2x32xf32>
      %665 = vector.shape_cast %664 : vector<1x2x32xf32> to vector<2x32xf32>
      %666 = vector.shape_cast %604 : vector<2x32xf32> to vector<1x2x32xf32>
      tpu.vector_store %arg7[%c0_187, %c0_188, %c0_189], %666 {strides = array<i32>} : memref<2x2x32xf32, #tpu.memory_space<vmem>>, vector<1x2x32xf32>,
      %c0_190 = arith.constant 0 : index
      %c0_191 = arith.constant 0 : index
      %c0_192 = arith.constant 0 : index
      %667 = vector.load %arg8[%c0_190, %c0_191, %c0_192] : memref<2x2x32xf32, #tpu.memory_space<vmem>>, vector<1x2x32xf32>
      %668 = vector.shape_cast %667 : vector<1x2x32xf32> to vector<2x32xf32>
      %669 = vector.shape_cast %602 : vector<2x32xf32> to vector<1x2x32xf32>
      tpu.vector_store %arg8[%c0_190, %c0_191, %c0_192], %669 {strides = array<i32>} : memref<2x2x32xf32, #tpu.memory_space<vmem>>, vector<1x2x32xf32>,
      %c1_193 = arith.constant 1 : index
      %c0_194 = arith.constant 0 : index
      %c0_195 = arith.constant 0 : index
      %670 = vector.load %arg7[%c1_193, %c0_194, %c0_195] : memref<2x2x32xf32, #tpu.memory_space<vmem>>, vector<1x2x32xf32>
      %671 = vector.shape_cast %670 : vector<1x2x32xf32> to vector<2x32xf32>
      %672 = vector.shape_cast %638 : vector<2x32xf32> to vector<1x2x32xf32>
      tpu.vector_store %arg7[%c1_193, %c0_194, %c0_195], %672 {strides = array<i32>} : memref<2x2x32xf32, #tpu.memory_space<vmem>>, vector<1x2x32xf32>,
      %c1_196 = arith.constant 1 : index
      %c0_197 = arith.constant 0 : index
      %c0_198 = arith.constant 0 : index
      %673 = vector.load %arg8[%c1_196, %c0_197, %c0_198] : memref<2x2x32xf32, #tpu.memory_space<vmem>>, vector<1x2x32xf32>
      %674 = vector.shape_cast %673 : vector<1x2x32xf32> to vector<2x32xf32>
      %675 = vector.shape_cast %636 : vector<2x32xf32> to vector<1x2x32xf32>
      tpu.vector_store %arg8[%c1_196, %c0_197, %c0_198], %675 {strides = array<i32>} : memref<2x2x32xf32, #tpu.memory_space<vmem>>, vector<1x2x32xf32>,
    } else {
    }
    return
  }
  func.func @transform_0(%arg0: i32) -> (i32, i32, i32, i32) {
    %c0_i32 = arith.constant 0 : i32
    %c0_i32_0 = arith.constant 0 : i32
    %c0_i32_1 = arith.constant 0 : i32
    %c0_i32_2 = arith.constant 0 : i32
    return %c0_i32, %arg0, %c0_i32_0, %c0_i32_1 : i32, i32, i32, i32
  }
  func.func @transform_1(%arg0: i32) -> (i32, i32, i32, i32) {
    %c0_i32 = arith.constant 0 : i32
    %0 = arith.subi %c0_i32, %arg0 : i32
    %c1_i32 = arith.constant 1 : i32
    %c0_i32_0 = arith.constant 0 : i32
    %c0_i32_1 = arith.constant 0 : i32
    %c0_i32_2 = arith.constant 0 : i32
    return %c1_i32, %0, %c0_i32_0, %c0_i32_1 : i32, i32, i32, i32
  }
  func.func @transform_2(%arg0: i32) -> (i32, i32, i32) {
    %c0_i32 = arith.constant 0 : i32
    %c0_i32_0 = arith.constant 0 : i32
    %c0_i32_1 = arith.constant 0 : i32
    %c0_i32_2 = arith.constant 0 : i32
    return %c0_i32, %c0_i32_0, %c0_i32_1 : i32, i32, i32
  }
  func.func @transform_3(%arg0: i32) -> (i32, i32) {
    %c0_i32 = arith.constant 0 : i32
    %c0_i32_0 = arith.constant 0 : i32
    %c0_i32_1 = arith.constant 0 : i32
    return %c0_i32, %c0_i32_0 : i32, i32
  }
  func.func @transform_4(%arg0: i32) -> (i32, i32, i32) {
    %c0_i32 = arith.constant 0 : i32
    %c0_i32_0 = arith.constant 0 : i32
    %c0_i32_1 = arith.constant 0 : i32
    return %arg0, %c0_i32, %c0_i32_0 : i32, i32, i32
  }
  func.func @transform_5(%arg0: i32) -> (i32, i32, i32) {
    %c0_i32 = arith.constant 0 : i32
    %0 = arith.subi %c0_i32, %arg0 : i32
    %c0_i32_0 = arith.constant 0 : i32
    %c0_i32_1 = arith.constant 0 : i32
    %c0_i32_2 = arith.constant 0 : i32
    return %0, %c0_i32_0, %c0_i32_1 : i32, i32, i32
  }
  func.func @transform_6(%arg0: i32) -> (i32, i32, i32) {
    %c0_i32 = arith.constant 0 : i32
    %c0_i32_0 = arith.constant 0 : i32
    %c0_i32_1 = arith.constant 0 : i32
    %c0_i32_2 = arith.constant 0 : i32
    return %c0_i32, %c0_i32_0, %c0_i32_1 : i32, i32, i32
  }
  func.func @transform_7(%arg0: i32) -> (i32, i32, i32) {
    %c0_i32 = arith.constant 0 : i32
    %c0_i32_0 = arith.constant 0 : i32
    %c0_i32_1 = arith.constant 0 : i32
    %c0_i32_2 = arith.constant 0 : i32
    return %c0_i32, %c0_i32_0, %c0_i32_1 : i32, i32, i32
  }
}

</mosaic_0001>

<bundles_post_ra>
// kernel: encoder_forward.2
= control target key start
LH: loop header
LB: loop body
LE: loop exit
PB: predicated region body
PF: predicated region fallthrough
CT: control target
= control target key end

     0   :  { %vm60_vm0 = vcmask 254976   ;;  %v1619_v2 = vmov 0.0   ;;  %vm99_vm1 = vcmask 261120   ;;  %s1621_s17 = smov 64   ;;  %s1622_s18 = smov 96   ;;  %s2149_s2 = inlined_call_operand.vmem [shape: bf16[2,32,128], index: 2, kind: input, shape index: {}]   ;;  %s2150_s3 = inlined_call_operand.vmem [shape: f32[2,128], index: 3, kind: input, shape index: {}]   ;;  %s2151_s0 = inlined_call_operand.vmem [shape: bf16[2,8,2,128], index: 0, kind: input, shape index: {}, may-alias: {0,1}]   ;;  %s2152_s1 = inlined_call_operand.vmem [shape: bf16[2,8,2,128], index: 1, kind: input, shape index: {}, may-alias: {0,1}]   ;;  %s2153_s4 = inlined_call_operand.vmem [shape: bf16[8,2,32], index: 4, kind: output, shape index: {0}]   ;;  %s2154_s5 = inlined_call_operand.vmem [shape: bf16[8,2,32], index: 5, kind: output, shape index: {1}]   ;;  %s2155_s6 = inlined_call_operand.vmem [shape: f32[2,2,32], index: 6, kind: output, shape index: {2}]   ;;  %s2156_s7 = inlined_call_operand.vmem [shape: f32[2,2,32], index: 7, kind: output, shape index: {3}]  }
   0x1   :  { %v1666_v0 = vld [vmem:[%s2149_s2 + $0x8] sm:$0xff]  ;;  %v1671_v1 = vld [vmem:[%s2149_s2 + $0x18] sm:$0xff]  ;;  %61 = vst.msk [vmem:[#allocation2] sm:$0x3] %vm60_vm0, %v1619_v2  ;;  %v1680_v3 = vld [vmem:[%s2149_s2] sm:$0xff] }
   0x2   :  { %62 = vst.msk [vmem:[#allocation2 + $0x2] sm:$0x3] %vm60_vm0, %v1619_v2  ;;  %109 = vmatpush.bf16.msra.mxu0 %v1666_v0  ;;  %185 = vmatpush.bf16.msra.mxu1 %v1671_v1  ;;  %v1686_v4 = vld [vmem:[%s2149_s2 + $0x10] sm:$0xff]  ;;  %s1620_s2 = smov 32   ;;  %v82_v11 = vld [vmem:[%s2151_s0] sm:$0x1] }
   0x3   :  { %63 = vst.msk [vmem:[#allocation3] sm:$0x3] %vm60_vm0, %v1619_v2  ;;  %276 = vmatpush.bf16.msra.mxu2 %v1666_v0  ;;  %338 = vmatpush.bf16.msra.mxu3 %v1671_v1  ;;  %v83_v12 = vunpack.c.l.bf16 %v82_v11  ;;  %v1717_v13 = vld [vmem:[%s2150_s3] ss:$0 sm:$0xff]  ;;  %v1410_v14 = vld [vmem:[%s2152_s1 + $0xf] sm:$0x1] }
   0x4   :  { %64 = vst.msk [vmem:[#allocation3 + $0x2] sm:$0x3] %vm60_vm0, %v1619_v2  ;;  %v160_v16 = vunpack.c.l.bf16 %v1410_v14  ;;  %v1726_v17 = vld [vmem:[%s2150_s3 + $0x1] ss:$0 sm:$0xff] }
   0x5   :  { %v85_v15 = vadd.f32 %v1717_v13, %v83_v12 }
   0x6   :  { %110 = vmatpush.bf16.msra.mxu0 %v1680_v3  ;;  %186 = vmatpush.bf16.msra.mxu1 %v1686_v4  ;;  %v162_v21 = vadd.f32 %v1726_v17, %v160_v16 }
   0x7   :  { %277 = vmatpush.bf16.msra.mxu2 %v1680_v3  ;;  %339 = vmatpush.bf16.msra.mxu3 %v1686_v4 }
   0x8   :  { %v76_v5 = vld [vmem:[#allocation2] sm:$0x3] }
   0x9   :  { %v86_v6 = vpack.c.bf16 %v76_v5, %v76_v5  ;;  %v79_v7 = vld [vmem:[#allocation2 + $0x2] sm:$0x3] }
   0xa   :  { %486 = vmatpush.bf16.msrb.mxu1 %v1671_v1  ;;  %424 = vmatpush.bf16.msrb.mxu0 %v1666_v0  ;;  %v163_v8 = vpack.c.bf16 %v79_v7, %v79_v7  ;;  %v77_v9 = vld [vmem:[#allocation3] sm:$0x3] }
   0xb   :  { %634 = vmatpush.bf16.msrb.mxu3 %v1671_v1  ;;  %572 = vmatpush.bf16.msrb.mxu2 %v1666_v0  ;;  %v81_v10 = vld [vmem:[#allocation3 + $0x2] sm:$0x3] }
   0xc   :  { %1408 = vmatmul.msk.bf16.vlgmr.msra.gmra.mxu0 %vm99_vm1, %v86_v6  ;;  %138 = vrot.lane.b32.xlu1 %v77_v9, %s1620_s2 }
   0xd   :  { %1419 = vmatmul.msk.bf16.vlgmr.msra.gmra.mxu1 %vm99_vm1, %v163_v8  ;;  %214 = vrot.lane.b32.xlu2 %v81_v10, %s1620_s2 }
   0xe   :  { %487 = vmatpush.bf16.msrb.mxu1 %v1686_v4  ;;  %425 = vmatpush.bf16.msrb.mxu0 %v1680_v3 }
   0xf   :  { %635 = vmatpush.bf16.msrb.mxu3 %v1686_v4  ;;  %573 = vmatpush.bf16.msrb.mxu2 %v1680_v3 }
  0x12   :  { %720 = vmatpush.bf16.msra.mxu0 %v1666_v0  ;;  %782 = vmatpush.bf16.msra.mxu1 %v1671_v1 }
  0x16   :  { %721 = vmatpush.bf16.msra.mxu0 %v1680_v3  ;;  %783 = vmatpush.bf16.msra.mxu1 %v1686_v4 }
  0x67   :  { %v215_v57 = vpop.permute.xlu2 %214 }
  0x7e   :  { %v139_v61 = vpop.permute.xlu1 %138 }
  0x89   :  { %v112_v18 = vpop.f32.mrf.mxu0 }
  0x8a   :  { %v116_v19 = vadd.f32 %v112_v18, %v85_v15  ;;  %v188_v20 = vpop.f32.mrf.mxu1 }
  0x8b   :  { %v192_v22 = vadd.f32 %v188_v20, %v162_v21  ;;  %v1422_v21 = vld [vmem:[%s2151_s0 + $0x1] sm:$0x1] }
  0x8c   :  { %1489 = vtanh.f32 %v116_v19  ;;  %v1409_v27 = vmul.f32 -1.442695, %v116_v19 }
  0x8d   :  { %1491 = vtanh.f32 %v192_v22  ;;  %v1420_v28 = vmul.f32 -1.442695, %v192_v22  ;;  %v261_v22 = vunpack.c.l.bf16 %v1422_v21 }
  0x8e   :  { %1493 = vpow2.f32 %v1409_v27 }
  0x8f   :  { %1495 = vpow2.f32 %v1420_v28 }
  0x91   :  { %v114_v23 = vpop.f32.mrf.mxu0 }
  0x92   :  { %v1490_v24 = vpop.eup %1489  ;;  %v190_v25 = vpop.f32.mrf.mxu1  ;;  %v262_v23 = vadd.f32 %v1717_v13, %v261_v22 }
  0x93   :  { %143 = vrot.lane.b32.xlu0 %v1490_v24, %s1621_s17  ;;  %v1492_v26 = vpop.eup %1491  ;;  %v1425_v24 = vld [vmem:[%s2152_s1 + $0xe] sm:$0x1] }
  0x94   :  { %v1494_v29 = vpop.eup %1493  ;;  %v323_v27 = vunpack.c.l.bf16 %v1425_v24 }
  0x95   :  { %v120_v30 = vadd.f32 1.0, %v1494_v29  ;;  %v1496_v31 = vpop.eup %1495 }
  0x96   :  { %v196_v32 = vadd.f32 1.0, %v1496_v31  ;;  %v324_v28 = vadd.f32 %v1726_v17, %v323_v27 }
  0x97   :  { %1497 = vrcp.f32 %v120_v30  ;;  %v132_v41 = vand.u32 2147483648, %v120_v30  ;;  %vm126_vm3 = vweird.f32 %v120_v30  ;;  %v130_v42 = vand.u32 2147483647, %v120_v30 }
  0x98   :  { %1499 = vrcp.f32 %v196_v32  ;;  %vm202_vm6 = vweird.f32 %v196_v32  ;;  %v208_v47 = vand.u32 2147483648, %v196_v32  ;;  %v206_v50 = vand.u32 2147483647, %v196_v32 }
  0x99   :  { %v133_v45 = vor.u32 1.1754944e-38, %v132_v41  ;;  %vm131_vm5 = vcmp.eq.f32.partialorder %v130_v42, 8.507059e+37 }
  0x9a   :  { %v209_v52 = vor.u32 1.1754944e-38, %v208_v47  ;;  %vm207_vm9 = vcmp.eq.f32.partialorder %v206_v50, 8.507059e+37 }
  0x9b   :  { %219 = vrot.lane.b32.xlu0 %v1492_v26, %s1621_s17 }
  0x9d   :  { %v1498_v33 = vpop.eup %1497 }
  0x9e   :  { %v122_v34 = vmul.f32 %v1498_v33, %v120_v30  ;;  %v1500_v36 = vpop.eup %1499  ;;  %vm127_vm2 = vweird.f32 %v1498_v33 }
  0x9f   :  { %v198_v38 = vmul.f32 %v1500_v36, %v196_v32  ;;  %vm128_vm4 = vmor %vm126_vm3, %vm127_vm2  ;;  %vm203_vm7 = vweird.f32 %v1500_v36 }
  0xa0   :  { %v123_v35 = vsub.f32 1.0, %v122_v34  ;;  %vm204_vm8 = vmor %vm202_vm6, %vm203_vm7 }
  0xa1   :  { %v199_v40 = vsub.f32 1.0, %v198_v38 }
  0xa2   :  { %v124_v37 = vmul.f32 %v1498_v33, %v123_v35 }
  0xa3   :  { %v200_v44 = vmul.f32 %v1500_v36, %v199_v40 }
  0xa4   :  { %v125_v39 = vadd.f32 %v1498_v33, %v124_v37 }
  0xa5   :  { %v201_v49 = vadd.f32 %v1500_v36, %v200_v44 }
  0xa6   :  { %v129_v43 = vsel %vm128_vm4, %v1498_v33, %v125_v39 }
  0xa7   :  { %v134_v46 = vsel %vm131_vm5, %v133_v45, %v129_v43  ;;  %v205_v53 = vsel %vm204_vm8, %v1500_v36, %v201_v49 }
  0xa8   :  { %v210_v54 = vsel %vm207_vm9, %v209_v52, %v205_v53  ;;  %v141_v63 = vmul.f32 %v139_v61, %v134_v46 }
  0xa9   :  { %v217_v58 = vmul.f32 %v215_v57, %v210_v54 }
 0x105   :  { %v144_v48 = vpop.permute.xlu0 %143 }
 0x106   :  { %v146_v51 = vmul.f32 %v144_v48, %v134_v46 }
 0x108   :  { %148 = vrot.lane.b32.xlu1 %v146_v51, %s1620_s2 }
 0x10d   :  { %v220_v55 = vpop.permute.xlu0 %219 }
 0x10e   :  { %v222_v56 = vmul.f32 %v220_v55, %v210_v54 }
 0x110   :  { %224 = vrot.lane.b32.xlu2 %v222_v56, %s1620_s2 }
 0x16a   :  { %v225_v59 = vpop.permute.xlu2 %224 }
 0x16b   :  { %v1733_v60 = vadd.f32 %v225_v59, %v217_v58 }
 0x16d   :  { %1501 = vtanh.f32 %v1733_v60 }
 0x173   :  { %v1502_v62 = vpop.eup %1501 }
 0x174   :  { %230 = vrot.lane.b32.xlu1 %v1502_v62, %s1621_s17 }
 0x17a   :  { %v149_v2 = vpop.permute.xlu1 %148 }
 0x17b   :  { %v1737_v5 = vadd.f32 %v149_v2, %v141_v63 }
 0x17d   :  { %1503 = vtanh.f32 %v1737_v5 }
 0x183   :  { %v1504_v6 = vpop.eup %1503 }
 0x184   :  { %154 = vrot.lane.b32.xlu0 %v1504_v6, %s1621_s17 }
 0x1e6   :  { %v231_v7 = vpop.permute.xlu1 %230 }
 0x1e7   :  { %v233_v8 = vmul.f32 %v231_v7, %v210_v54 }
 0x1e9   :  { %v1741_v9 = vpack.c.bf16 %v233_v8, %v233_v8 }
 0x1eb   :  { %v325_v10 = vunpack.c.l.b16 %v1741_v9 }
 0x1ed   :  { %v326_v11 = vpack.c.b16 %v325_v10, %v325_v10 }
 0x1ef   :  { %327 = vrot.lane.b32.xlu0 %v326_v11, %s1620_s2 }
 0x1f6   :  { %v155_v12 = vpop.permute.xlu0 %154 }
 0x1f7   :  { %v157_v14 = vmul.f32 %v155_v12, %v134_v46 }
 0x1f9   :  { %v1745_v15 = vpack.c.bf16 %v157_v14, %v157_v14 }
 0x1fb   :  { %v263_v16 = vunpack.c.l.b16 %v1745_v15 }
 0x1fd   :  { %v264_v18 = vpack.c.b16 %v263_v16, %v263_v16 }
 0x1ff   :  { %265 = vrot.lane.b32.xlu2 %v264_v18, %s1620_s2 }
 0x259   :  { %v266_v19 = vpop.permute.xlu2 %265 }
 0x25a   :  { %1423 = vmatmul.msk.bf16.vlgmr.msra.gmra.mxu2 %vm99_vm1, %v266_v19 }
 0x25b   :  { %868 = vmatpush.bf16.msra.mxu2 %v1666_v0 }
 0x25f   :  { %869 = vmatpush.bf16.msra.mxu2 %v1680_v3 }
 0x261   :  { %v328_v20 = vpop.permute.xlu0 %327 }
 0x262   :  { %1426 = vmatmul.msk.bf16.vlgmr.msra.gmra.mxu3 %vm99_vm1, %v328_v20 }
 0x263   :  { %930 = vmatpush.bf16.msra.mxu3 %v1671_v1 }
 0x267   :  { %931 = vmatpush.bf16.msra.mxu3 %v1686_v4 }
 0x2dd   :  { %v279_v25 = vpop.f32.mrf.mxu2 }
 0x2de   :  { %v283_v26 = vadd.f32 %v279_v25, %v262_v23 }
 0x2e0   :  { %1505 = vtanh.f32 %v283_v26  ;;  %v1424_v38 = vmul.f32 -1.442695, %v283_v26 }
 0x2e5   :  { %v281_v29 = vpop.f32.mrf.mxu2  ;;  %v341_v30 = vpop.f32.mrf.mxu3 }
 0x2e6   :  { %v1506_v31 = vpop.eup %1505  ;;  %v345_v32 = vadd.f32 %v341_v30, %v324_v28  ;;  %v1433_v29 = vld [vmem:[%s2152_s1 + $0xd] sm:$0x1] }
 0x2e7   :  { %306 = vrot.lane.b32.xlu1 %v1506_v31, %s1621_s17  ;;  %v471_v30 = vunpack.c.l.bf16 %v1433_v29 }
 0x2e8   :  { %1507 = vtanh.f32 %v345_v32  ;;  %v1427_v35 = vmul.f32 -1.442695, %v345_v32 }
 0x2e9   :  { %v472_v31 = vadd.f32 %v1726_v17, %v471_v30 }
 0x2ea   :  { %1509 = vpow2.f32 %v1427_v35 }
 0x2ed   :  { %v343_v33 = vpop.f32.mrf.mxu3 }
 0x2ee   :  { %v1508_v34 = vpop.eup %1507 }
 0x2ef   :  { %368 = vrot.lane.b32.xlu2 %v1508_v34, %s1621_s17  ;;  %v1430_v34 = vld [vmem:[%s2151_s0 + $0x2] sm:$0x1] }
 0x2f0   :  { %v1510_v36 = vpop.eup %1509 }
 0x2f1   :  { %v349_v37 = vadd.f32 1.0, %v1510_v36 }
 0x2f3   :  { %1511 = vrcp.f32 %v349_v37  ;;  %v361_v47 = vand.u32 2147483648, %v349_v37  ;;  %vm355_vm11 = vweird.f32 %v349_v37  ;;  %v359_v48 = vand.u32 2147483647, %v349_v37 }
 0x2f4   :  { %1513 = vpow2.f32 %v1424_v38 }
 0x2f5   :  { %v362_v51 = vor.u32 1.1754944e-38, %v361_v47  ;;  %vm360_vm13 = vcmp.eq.f32.partialorder %v359_v48, 8.507059e+37 }
 0x2f9   :  { %v1512_v39 = vpop.eup %1511 }
 0x2fa   :  { %v1514_v40 = vpop.eup %1513  ;;  %v351_v41 = vmul.f32 %v1512_v39, %v349_v37  ;;  %vm356_vm10 = vweird.f32 %v1512_v39  ;;  %v409_v37 = vunpack.c.l.bf16 %v1430_v34 }
 0x2fb   :  { %v287_v42 = vadd.f32 1.0, %v1514_v40  ;;  %vm357_vm12 = vmor %vm355_vm11, %vm356_vm10 }
 0x2fc   :  { %v352_v43 = vsub.f32 1.0, %v351_v41  ;;  %v410_v38 = vadd.f32 %v1717_v13, %v409_v37 }
 0x2fd   :  { %1515 = vrcp.f32 %v287_v42  ;;  %v299_v58 = vand.u32 2147483648, %v287_v42  ;;  %vm293_vm15 = vweird.f32 %v287_v42  ;;  %v297_v59 = vand.u32 2147483647, %v287_v42 }
 0x2fe   :  { %v353_v44 = vmul.f32 %v1512_v39, %v352_v43 }
 0x2ff   :  { %v300_v62 = vor.u32 1.1754944e-38, %v299_v58  ;;  %vm298_vm3 = vcmp.eq.f32.partialorder %v297_v59, 8.507059e+37 }
 0x300   :  { %v354_v45 = vadd.f32 %v1512_v39, %v353_v44 }
 0x302   :  { %v358_v49 = vsel %vm357_vm12, %v1512_v39, %v354_v45 }
 0x303   :  { %v1516_v46 = vpop.eup %1515  ;;  %v363_v53 = vsel %vm360_vm13, %v362_v51, %v358_v49 }
 0x304   :  { %v289_v50 = vmul.f32 %v1516_v46, %v287_v42  ;;  %vm294_vm14 = vweird.f32 %v1516_v46  ;;  %v366_v7 = vmul.f32 %v363_v53, %v1733_v60 }
 0x305   :  { %vm295_vm2 = vmor %vm293_vm15, %vm294_vm14 }
 0x306   :  { %v290_v55 = vsub.f32 1.0, %v289_v50 }
 0x308   :  { %v291_v56 = vmul.f32 %v1516_v46, %v290_v55 }
 0x30a   :  { %v292_v57 = vadd.f32 %v1516_v46, %v291_v56 }
 0x30c   :  { %v296_v61 = vsel %vm295_vm2, %v1516_v46, %v292_v57 }
 0x30d   :  { %v301_v2 = vsel %vm298_vm3, %v300_v62, %v296_v61 }
 0x30e   :  { %v304_v12 = vmul.f32 %v301_v2, %v1737_v5 }
 0x349   :  { %v369_v52 = vpop.permute.xlu2 %368 }
 0x34a   :  { %v371_v54 = vmul.f32 %v369_v52, %v363_v53 }
 0x34c   :  { %373 = vrot.lane.b32.xlu1 %v371_v54, %s1620_s2 }
 0x359   :  { %v307_v63 = vpop.permute.xlu1 %306 }
 0x35a   :  { %v309_v6 = vmul.f32 %v307_v63, %v301_v2 }
 0x35c   :  { %311 = vrot.lane.b32.xlu0 %v309_v6, %s1620_s2 }
 0x3be   :  { %v374_v8 = vpop.permute.xlu1 %373 }
 0x3bf   :  { %v1768_v10 = vadd.f32 %v374_v8, %v366_v7 }
 0x3c1   :  { %1517 = vtanh.f32 %v1768_v10 }
 0x3c7   :  { %v1518_v11 = vpop.eup %1517 }
 0x3c8   :  { %379 = vrot.lane.b32.xlu0 %v1518_v11, %s1621_s17 }
 0x3ce   :  { %v312_v14 = vpop.permute.xlu0 %311 }
 0x3cf   :  { %v1773_v16 = vadd.f32 %v312_v14, %v304_v12 }
 0x3d1   :  { %1519 = vtanh.f32 %v1773_v16 }
 0x3d7   :  { %v1520_v18 = vpop.eup %1519 }
 0x3d8   :  { %317 = vrot.lane.b32.xlu2 %v1520_v18, %s1621_s17 }
 0x432   :  { %v318_v19 = vpop.permute.xlu2 %317 }
 0x433   :  { %v320_v60 = vmul.f32 %v318_v19, %v301_v2 }
 0x435   :  { %v1777_v20 = vpack.c.bf16 %v320_v60, %v320_v60 }
 0x437   :  { %v411_v21 = vunpack.c.l.b16 %v1777_v20 }
 0x439   :  { %v412_v22 = vpack.c.b16 %v411_v21, %v411_v21 }
 0x43a   :  { %v380_v23 = vpop.permute.xlu0 %379 }
 0x43b   :  { %v382_v24 = vmul.f32 %v380_v23, %v363_v53  ;;  %413 = vrot.lane.b32.xlu1 %v412_v22, %s1620_s2 }
 0x43d   :  { %v1781_v5 = vpack.c.bf16 %v382_v24, %v382_v24 }
 0x43f   :  { %v473_v25 = vunpack.c.l.b16 %v1781_v5 }
 0x441   :  { %v474_v26 = vpack.c.b16 %v473_v25, %v473_v25 }
 0x443   :  { %475 = vrot.lane.b32.xlu2 %v474_v26, %s1620_s2 }
 0x49d   :  { %v476_v27 = vpop.permute.xlu2 %475 }
 0x49e   :  { %1434 = vmatmul.msk.bf16.vlgmr.msrb.gmra.mxu1 %vm99_vm1, %v476_v27 }
 0x49f   :  { %1078 = vmatpush.bf16.msrb.mxu1 %v1671_v1 }
 0x4a3   :  { %1079 = vmatpush.bf16.msrb.mxu1 %v1686_v4 }
 0x4ad   :  { %v414_v28 = vpop.permute.xlu1 %413 }
 0x4ae   :  { %1431 = vmatmul.msk.bf16.vlgmr.msrb.gmra.mxu0 %vm99_vm1, %v414_v28 }
 0x4af   :  { %1016 = vmatpush.bf16.msrb.mxu0 %v1666_v0 }
 0x4b3   :  { %1017 = vmatpush.bf16.msrb.mxu0 %v1680_v3 }
 0x51b   :  { %v489_v32 = vpop.f32.mrf.mxu1 }
 0x51c   :  { %v493_v33 = vadd.f32 %v489_v32, %v472_v31 }
 0x51e   :  { %1521 = vtanh.f32 %v493_v33  ;;  %v1435_v43 = vmul.f32 -1.442695, %v493_v33 }
 0x523   :  { %v491_v35 = vpop.f32.mrf.mxu1 }
 0x524   :  { %v1522_v36 = vpop.eup %1521 }
 0x525   :  { %516 = vrot.lane.b32.xlu1 %v1522_v36, %s1621_s17 }
 0x52b   :  { %v427_v39 = vpop.f32.mrf.mxu0 }
 0x52c   :  { %v431_v40 = vadd.f32 %v427_v39, %v410_v38  ;;  %v1441_v39 = vld [vmem:[%s2152_s1 + $0xc] sm:$0x1] }
 0x52e   :  { %1523 = vtanh.f32 %v431_v40  ;;  %v1432_v46 = vmul.f32 -1.442695, %v431_v40  ;;  %v619_v40 = vunpack.c.l.bf16 %v1441_v39 }
 0x52f   :  { %1525 = vpow2.f32 %v1435_v43 }
 0x533   :  { %v429_v41 = vpop.f32.mrf.mxu0 }
 0x534   :  { %v1524_v42 = vpop.eup %1523  ;;  %v620_v41 = vadd.f32 %v1726_v17, %v619_v40 }
 0x535   :  { %454 = vrot.lane.b32.xlu0 %v1524_v42, %s1621_s17  ;;  %v1526_v44 = vpop.eup %1525 }
 0x536   :  { %v497_v45 = vadd.f32 1.0, %v1526_v44 }
 0x538   :  { %1527 = vrcp.f32 %v497_v45  ;;  %v509_v55 = vand.u32 2147483648, %v497_v45  ;;  %vm503_vm5 = vweird.f32 %v497_v45  ;;  %v507_v56 = vand.u32 2147483647, %v497_v45 }
 0x539   :  { %1529 = vpow2.f32 %v1432_v46 }
 0x53a   :  { %v510_v59 = vor.u32 1.1754944e-38, %v509_v55  ;;  %vm508_vm7 = vcmp.eq.f32.partialorder %v507_v56, 8.507059e+37 }
 0x53e   :  { %v1528_v47 = vpop.eup %1527 }
 0x53f   :  { %v1530_v48 = vpop.eup %1529  ;;  %v499_v49 = vmul.f32 %v1528_v47, %v497_v45  ;;  %vm504_vm4 = vweird.f32 %v1528_v47 }
 0x540   :  { %v435_v50 = vadd.f32 1.0, %v1530_v48  ;;  %vm505_vm6 = vmor %vm503_vm5, %vm504_vm4 }
 0x541   :  { %v500_v51 = vsub.f32 1.0, %v499_v49 }
 0x542   :  { %1531 = vrcp.f32 %v435_v50  ;;  %v447_v8 = vand.u32 2147483648, %v435_v50  ;;  %vm441_vm9 = vweird.f32 %v435_v50  ;;  %v445_v11 = vand.u32 2147483647, %v435_v50 }
 0x543   :  { %v501_v52 = vmul.f32 %v1528_v47, %v500_v51 }
 0x544   :  { %v448_v14 = vor.u32 1.1754944e-38, %v447_v8  ;;  %vm446_vm11 = vcmp.eq.f32.partialorder %v445_v11, 8.507059e+37 }
 0x545   :  { %v502_v53 = vadd.f32 %v1528_v47, %v501_v52 }
 0x547   :  { %v506_v57 = vsel %vm505_vm6, %v1528_v47, %v502_v53 }
 0x548   :  { %v1532_v54 = vpop.eup %1531  ;;  %v511_v62 = vsel %vm508_vm7, %v510_v59, %v506_v57 }
 0x549   :  { %v437_v58 = vmul.f32 %v1532_v54, %v435_v50  ;;  %vm442_vm8 = vweird.f32 %v1532_v54  ;;  %v514_v24 = vmul.f32 %v511_v62, %v1768_v10 }
 0x54a   :  { %vm443_vm10 = vmor %vm441_vm9, %vm442_vm8 }
 0x54b   :  { %v438_v2 = vsub.f32 1.0, %v437_v58 }
 0x54d   :  { %v439_v6 = vmul.f32 %v1532_v54, %v438_v2 }
 0x54f   :  { %v440_v7 = vadd.f32 %v1532_v54, %v439_v6 }
 0x551   :  { %v444_v12 = vsel %vm443_vm10, %v1532_v54, %v440_v7 }
 0x552   :  { %v449_v18 = vsel %vm446_vm11, %v448_v14, %v444_v12 }
 0x553   :  { %v452_v21 = vmul.f32 %v449_v18, %v1773_v16 }
 0x597   :  { %v517_v61 = vpop.permute.xlu1 %516 }
 0x598   :  { %v519_v63 = vmul.f32 %v517_v61, %v511_v62 }
 0x59a   :  { %521 = vrot.lane.b32.xlu0 %v519_v63, %s1620_s2 }
 0x5a7   :  { %v455_v19 = vpop.permute.xlu0 %454 }
 0x5a8   :  { %v457_v60 = vmul.f32 %v455_v19, %v449_v18 }
 0x5aa   :  { %459 = vrot.lane.b32.xlu2 %v457_v60, %s1620_s2 }
 0x604   :  { %v460_v22 = vpop.permute.xlu2 %459 }
 0x605   :  { %v1804_v23 = vadd.f32 %v460_v22, %v452_v21 }
 0x607   :  { %1533 = vtanh.f32 %v1804_v23 }
 0x60c   :  { %v522_v25 = vpop.permute.xlu0 %521 }
 0x60d   :  { %v1534_v26 = vpop.eup %1533  ;;  %v1808_v27 = vadd.f32 %v522_v25, %v514_v24 }
 0x60e   :  { %465 = vrot.lane.b32.xlu1 %v1534_v26, %s1621_s17 }
 0x60f   :  { %1535 = vtanh.f32 %v1808_v27 }
 0x615   :  { %v1536_v28 = vpop.eup %1535 }
 0x616   :  { %527 = vrot.lane.b32.xlu2 %v1536_v28, %s1621_s17 }
 0x670   :  { %v528_v29 = vpop.permute.xlu2 %527 }
 0x671   :  { %v530_v16 = vmul.f32 %v528_v29, %v511_v62 }
 0x673   :  { %v1813_v30 = vpack.c.bf16 %v530_v16, %v530_v16 }
 0x675   :  { %v621_v31 = vunpack.c.l.b16 %v1813_v30 }
 0x677   :  { %v622_v32 = vpack.c.b16 %v621_v31, %v621_v31 }
 0x679   :  { %623 = vrot.lane.b32.xlu1 %v622_v32, %s1620_s2 }
 0x680   :  { %v466_v10 = vpop.permute.xlu1 %465 }
 0x681   :  { %v468_v33 = vmul.f32 %v466_v10, %v449_v18 }
 0x683   :  { %v1817_v34 = vpack.c.bf16 %v468_v33, %v468_v33 }
 0x685   :  { %v559_v35 = vunpack.c.l.b16 %v1817_v34 }
 0x687   :  { %v560_v36 = vpack.c.b16 %v559_v35, %v559_v35 }
 0x689   :  { %561 = vrot.lane.b32.xlu0 %v560_v36, %s1620_s2 }
 0x6eb   :  { %v624_v37 = vpop.permute.xlu1 %623 }
 0x6ec   :  { %1442 = vmatmul.msk.bf16.vlgmr.msrb.gmra.mxu3 %vm99_vm1, %v624_v37 }
 0x6ed   :  { %1225 = vmatpush.bf16.msrb.mxu3 %v1671_v1  ;;  %v1438_v1 = vld [vmem:[%s2151_s0 + $0x3] sm:$0x1] }
 0x6ee   :  { %v557_v45 = vunpack.c.l.bf16 %v1438_v1 }
 0x6f1   :  { %1226 = vmatpush.bf16.msrb.mxu3 %v1686_v4 }
 0x6fb   :  { %v562_v38 = vpop.permute.xlu0 %561 }
 0x6fc   :  { %1439 = vmatmul.msk.bf16.vlgmr.msrb.gmra.mxu2 %vm99_vm1, %v562_v38 }
 0x6fd   :  { %1164 = vmatpush.bf16.msrb.mxu2 %v1666_v0  ;;  %v558_v0 = vadd.f32 %v1717_v13, %v557_v45  ;;  %v1446_v45 = vld [vmem:[%s2151_s0 + $0x4] sm:$0x1] }
 0x701   :  { %1165 = vmatpush.bf16.msrb.mxu2 %v1680_v3 }
 0x76f   :  { %v637_v42 = vpop.f32.mrf.mxu3 }
 0x770   :  { %v641_v43 = vadd.f32 %v637_v42, %v620_v41 }
 0x772   :  { %1537 = vtanh.f32 %v641_v43  ;;  %v1443_v50 = vmul.f32 -1.442695, %v641_v43 }
 0x777   :  { %v639_v4 = vpop.f32.mrf.mxu3 }
 0x778   :  { %v1538_v44 = vpop.eup %1537 }
 0x779   :  { %664 = vrot.lane.b32.xlu0 %v1538_v44, %s1621_s17 }
 0x77f   :  { %v575_v3 = vpop.f32.mrf.mxu2 }
 0x780   :  { %v579_v46 = vadd.f32 %v575_v3, %v558_v0  ;;  %v705_v0 = vunpack.c.l.bf16 %v1446_v45 }
 0x782   :  { %1539 = vtanh.f32 %v579_v46  ;;  %v1440_v49 = vmul.f32 -1.442695, %v579_v46  ;;  %v706_v3 = vadd.f32 %v1717_v13, %v705_v0  ;;  %v1449_v46 = vld [vmem:[%s2152_s1 + $0xb] sm:$0x1] }
 0x784   :  { %1541 = vpow2.f32 %v1440_v49  ;;  %v767_v49 = vunpack.c.l.bf16 %v1449_v46 }
 0x785   :  { %1543 = vpow2.f32 %v1443_v50 }
 0x786   :  { %v768_v50 = vadd.f32 %v1726_v17, %v767_v49 }
 0x787   :  { %v577_v47 = vpop.f32.mrf.mxu2 }
 0x788   :  { %v1540_v48 = vpop.eup %1539 }
 0x789   :  { %602 = vrot.lane.b32.xlu2 %v1540_v48, %s1621_s17 }
 0x78a   :  { %v1542_v51 = vpop.eup %1541 }
 0x78b   :  { %v583_v52 = vadd.f32 1.0, %v1542_v51  ;;  %v1544_v53 = vpop.eup %1543 }
 0x78c   :  { %v645_v54 = vadd.f32 1.0, %v1544_v53 }
 0x78d   :  { %1545 = vrcp.f32 %v583_v52  ;;  %v595_v2 = vand.u32 2147483648, %v583_v52  ;;  %vm589_vm13 = vweird.f32 %v583_v52  ;;  %v593_v6 = vand.u32 2147483647, %v583_v52 }
 0x78e   :  { %1547 = vrcp.f32 %v645_v54  ;;  %v657_v60 = vand.u32 2147483648, %v645_v54  ;;  %vm651_vm3 = vweird.f32 %v645_v54  ;;  %v655_v21 = vand.u32 2147483647, %v645_v54 }
 0x78f   :  { %v596_v11 = vor.u32 1.1754944e-38, %v595_v2  ;;  %vm594_vm15 = vcmp.eq.f32.partialorder %v593_v6, 8.507059e+37 }
 0x790   :  { %v658_v24 = vor.u32 1.1754944e-38, %v657_v60  ;;  %vm656_vm5 = vcmp.eq.f32.partialorder %v655_v21, 8.507059e+37 }
 0x793   :  { %v1546_v55 = vpop.eup %1545 }
 0x794   :  { %v585_v56 = vmul.f32 %v1546_v55, %v583_v52  ;;  %v1548_v58 = vpop.eup %1547  ;;  %vm590_vm12 = vweird.f32 %v1546_v55 }
 0x795   :  { %v647_v61 = vmul.f32 %v1548_v58, %v645_v54  ;;  %vm591_vm14 = vmor %vm589_vm13, %vm590_vm12  ;;  %vm652_vm2 = vweird.f32 %v1548_v58 }
 0x796   :  { %v586_v57 = vsub.f32 1.0, %v585_v56  ;;  %vm653_vm4 = vmor %vm651_vm3, %vm652_vm2 }
 0x797   :  { %v648_v63 = vsub.f32 1.0, %v647_v61 }
 0x798   :  { %v587_v59 = vmul.f32 %v1546_v55, %v586_v57 }
 0x799   :  { %v649_v8 = vmul.f32 %v1548_v58, %v648_v63 }
 0x79a   :  { %v588_v62 = vadd.f32 %v1546_v55, %v587_v59 }
 0x79b   :  { %v650_v19 = vadd.f32 %v1548_v58, %v649_v8 }
 0x79c   :  { %v592_v7 = vsel %vm591_vm14, %v1546_v55, %v588_v62 }
 0x79d   :  { %v597_v14 = vsel %vm594_vm15, %v596_v11, %v592_v7  ;;  %v654_v22 = vsel %vm653_vm4, %v1548_v58, %v650_v19 }
 0x79e   :  { %v659_v25 = vsel %vm656_vm5, %v658_v24, %v654_v22  ;;  %v600_v10 = vmul.f32 %v597_v14, %v1804_v23 }
 0x79f   :  { %v662_v29 = vmul.f32 %v659_v25, %v1808_v27 }
 0x7e3   :  { %v603_v12 = vpop.permute.xlu2 %602 }
 0x7e4   :  { %v605_v18 = vmul.f32 %v603_v12, %v597_v14 }
 0x7e6   :  { %607 = vrot.lane.b32.xlu1 %v605_v18, %s1620_s2 }
 0x7eb   :  { %v665_v26 = vpop.permute.xlu0 %664 }
 0x7ec   :  { %v667_v28 = vmul.f32 %v665_v26, %v659_v25 }
 0x7ee   :  { %669 = vrot.lane.b32.xlu2 %v667_v28, %s1620_s2 }
 0x848   :  { %v670_v16 = vpop.permute.xlu2 %669 }
 0x849   :  { %v1840_v31 = vadd.f32 %v670_v16, %v662_v29 }
 0x84b   :  { %1549 = vtanh.f32 %v1840_v31 }
 0x851   :  { %v1550_v32 = vpop.eup %1549 }
 0x852   :  { %675 = vrot.lane.b32.xlu1 %v1550_v32, %s1621_s17 }
 0x858   :  { %v608_v33 = vpop.permute.xlu1 %607 }
 0x859   :  { %v1845_v35 = vadd.f32 %v608_v33, %v600_v10 }
 0x85b   :  { %1551 = vtanh.f32 %v1845_v35 }
 0x861   :  { %v1552_v36 = vpop.eup %1551 }
 0x862   :  { %613 = vrot.lane.b32.xlu0 %v1552_v36, %s1621_s17 }
 0x8c4   :  { %v676_v37 = vpop.permute.xlu1 %675 }
 0x8c5   :  { %v678_v27 = vmul.f32 %v676_v37, %v659_v25 }
 0x8c7   :  { %v1849_v38 = vpack.c.bf16 %v678_v27, %v678_v27 }
 0x8c9   :  { %v769_v39 = vunpack.c.l.b16 %v1849_v38 }
 0x8cb   :  { %v770_v40 = vpack.c.b16 %v769_v39, %v769_v39 }
 0x8cd   :  { %771 = vrot.lane.b32.xlu0 %v770_v40, %s1620_s2 }
 0x8d4   :  { %v614_v41 = vpop.permute.xlu0 %613 }
 0x8d5   :  { %v616_v42 = vmul.f32 %v614_v41, %v597_v14 }
 0x8d7   :  { %v1853_v23 = vpack.c.bf16 %v616_v42, %v616_v42 }
 0x8d9   :  { %v707_v43 = vunpack.c.l.b16 %v1853_v23 }
 0x8db   :  { %v708_v1 = vpack.c.b16 %v707_v43, %v707_v43 }
 0x8dd   :  { %709 = vrot.lane.b32.xlu2 %v708_v1, %s1620_s2 }
 0x937   :  { %v710_v4 = vpop.permute.xlu2 %709 }
 0x938   :  { %1447 = vmatmul.msk.bf16.vlgmr.msra.gmra.mxu0 %vm99_vm1, %v710_v4 }
 0x93f   :  { %v772_v44 = vpop.permute.xlu0 %771 }
 0x940   :  { %1450 = vmatmul.msk.bf16.vlgmr.msra.gmra.mxu1 %vm99_vm1, %v772_v44 }
 0x9b5   :  { %v723_v47 = vpop.f32.mrf.mxu0 }
 0x9b6   :  { %v727_v48 = vadd.f32 %v723_v47, %v706_v3 }
 0x9b8   :  { %1553 = vtanh.f32 %v727_v48  ;;  %v1448_v61 = vmul.f32 -1.442695, %v727_v48 }
 0x9bd   :  { %v725_v51 = vpop.f32.mrf.mxu0  ;;  %v785_v52 = vpop.f32.mrf.mxu1 }
 0x9be   :  { %v1554_v53 = vpop.eup %1553  ;;  %v789_v54 = vadd.f32 %v785_v52, %v768_v50 }
 0x9bf   :  { %750 = vrot.lane.b32.xlu1 %v1554_v53, %s1621_s17  ;;  %v1457_v53 = vld [vmem:[%s2152_s1 + $0xa] sm:$0x1] }
 0x9c0   :  { %1555 = vtanh.f32 %v789_v54  ;;  %v1451_v57 = vmul.f32 -1.442695, %v789_v54  ;;  %v915_v54 = vunpack.c.l.bf16 %v1457_v53 }
 0x9c2   :  { %1557 = vpow2.f32 %v1451_v57 }
 0x9c5   :  { %v787_v55 = vpop.f32.mrf.mxu1 }
 0x9c6   :  { %v1556_v56 = vpop.eup %1555  ;;  %v916_v55 = vadd.f32 %v1726_v17, %v915_v54 }
 0x9c7   :  { %812 = vrot.lane.b32.xlu2 %v1556_v56, %s1621_s17 }
 0x9c8   :  { %v1558_v58 = vpop.eup %1557 }
 0x9c9   :  { %v793_v59 = vadd.f32 1.0, %v1558_v58  ;;  %v1454_v58 = vld [vmem:[%s2151_s0 + $0x5] sm:$0x1] }
 0x9cb   :  { %1559 = vrcp.f32 %v793_v59  ;;  %v805_v14 = vand.u32 2147483648, %v793_v59  ;;  %vm799_vm7 = vweird.f32 %v793_v59  ;;  %v803_v18 = vand.u32 2147483647, %v793_v59 }
 0x9cc   :  { %1561 = vpow2.f32 %v1448_v61 }
 0x9cd   :  { %v806_v21 = vor.u32 1.1754944e-38, %v805_v14  ;;  %vm804_vm9 = vcmp.eq.f32.partialorder %v803_v18, 8.507059e+37 }
 0x9d1   :  { %v1560_v62 = vpop.eup %1559 }
 0x9d2   :  { %v1562_v63 = vpop.eup %1561  ;;  %v795_v2 = vmul.f32 %v1560_v62, %v793_v59  ;;  %vm800_vm6 = vweird.f32 %v1560_v62 }
 0x9d3   :  { %v731_v6 = vadd.f32 1.0, %v1562_v63  ;;  %vm801_vm8 = vmor %vm799_vm7, %vm800_vm6 }
 0x9d4   :  { %v796_v7 = vsub.f32 1.0, %v795_v2 }
 0x9d5   :  { %1563 = vrcp.f32 %v731_v6  ;;  %v743_v16 = vand.u32 2147483648, %v731_v6  ;;  %vm737_vm11 = vweird.f32 %v731_v6  ;;  %v741_v32 = vand.u32 2147483647, %v731_v6 }
 0x9d6   :  { %v797_v8 = vmul.f32 %v1560_v62, %v796_v7 }
 0x9d7   :  { %v744_v33 = vor.u32 1.1754944e-38, %v743_v16  ;;  %vm742_vm13 = vcmp.eq.f32.partialorder %v741_v32, 8.507059e+37 }
 0x9d8   :  { %v798_v11 = vadd.f32 %v1560_v62, %v797_v8 }
 0x9da   :  { %v802_v19 = vsel %vm801_vm8, %v1560_v62, %v798_v11  ;;  %v853_v62 = vunpack.c.l.bf16 %v1454_v58 }
 0x9db   :  { %v1564_v12 = vpop.eup %1563  ;;  %v807_v24 = vsel %vm804_vm9, %v806_v21, %v802_v19 }
 0x9dc   :  { %v733_v60 = vmul.f32 %v1564_v12, %v731_v6  ;;  %vm738_vm10 = vweird.f32 %v1564_v12  ;;  %v810_v39 = vmul.f32 %v807_v24, %v1840_v31  ;;  %v854_v63 = vadd.f32 %v1717_v13, %v853_v62 }
 0x9dd   :  { %vm739_vm12 = vmor %vm737_vm11, %vm738_vm10 }
 0x9de   :  { %v734_v26 = vsub.f32 1.0, %v733_v60 }
 0x9e0   :  { %v735_v28 = vmul.f32 %v1564_v12, %v734_v26 }
 0x9e2   :  { %v736_v29 = vadd.f32 %v1564_v12, %v735_v28 }
 0x9e4   :  { %v740_v10 = vsel %vm739_vm12, %v1564_v12, %v736_v29 }
 0x9e5   :  { %v745_v37 = vsel %vm742_vm13, %v744_v33, %v740_v10 }
 0x9e6   :  { %v748_v43 = vmul.f32 %v745_v37, %v1845_v35 }
 0xa21   :  { %v813_v22 = vpop.permute.xlu2 %812 }
 0xa22   :  { %v815_v25 = vmul.f32 %v813_v22, %v807_v24 }
 0xa24   :  { %817 = vrot.lane.b32.xlu1 %v815_v25, %s1620_s2 }
 0xa31   :  { %v751_v36 = vpop.permute.xlu1 %750 }
 0xa32   :  { %v753_v27 = vmul.f32 %v751_v36, %v745_v37 }
 0xa34   :  { %755 = vrot.lane.b32.xlu0 %v753_v27, %s1620_s2 }
 0xa96   :  { %v818_v40 = vpop.permute.xlu1 %817 }
 0xa97   :  { %v1872_v41 = vadd.f32 %v818_v40, %v810_v39 }
 0xa99   :  { %1565 = vtanh.f32 %v1872_v41 }
 0xa9f   :  { %v1566_v42 = vpop.eup %1565 }
 0xaa0   :  { %823 = vrot.lane.b32.xlu0 %v1566_v42, %s1621_s17 }
 0xaa6   :  { %v756_v1 = vpop.permute.xlu0 %755 }
 0xaa7   :  { %v1877_v4 = vadd.f32 %v756_v1, %v748_v43 }
 0xaa9   :  { %1567 = vtanh.f32 %v1877_v4 }
 0xaaf   :  { %v1568_v44 = vpop.eup %1567 }
 0xab0   :  { %761 = vrot.lane.b32.xlu2 %v1568_v44, %s1621_s17 }
 0xb0a   :  { %v762_v45 = vpop.permute.xlu2 %761 }
 0xb0b   :  { %v764_v31 = vmul.f32 %v762_v45, %v745_v37 }
 0xb0d   :  { %v1881_v0 = vpack.c.bf16 %v764_v31, %v764_v31 }
 0xb0f   :  { %v855_v3 = vunpack.c.l.b16 %v1881_v0 }
 0xb11   :  { %v856_v46 = vpack.c.b16 %v855_v3, %v855_v3 }
 0xb12   :  { %v824_v47 = vpop.permute.xlu0 %823 }
 0xb13   :  { %v826_v48 = vmul.f32 %v824_v47, %v807_v24  ;;  %857 = vrot.lane.b32.xlu1 %v856_v46, %s1620_s2 }
 0xb15   :  { %v1885_v35 = vpack.c.bf16 %v826_v48, %v826_v48 }
 0xb17   :  { %v917_v49 = vunpack.c.l.b16 %v1885_v35 }
 0xb19   :  { %v918_v50 = vpack.c.b16 %v917_v49, %v917_v49 }
 0xb1b   :  { %919 = vrot.lane.b32.xlu2 %v918_v50, %s1620_s2 }
 0xb75   :  { %v920_v51 = vpop.permute.xlu2 %919 }
 0xb76   :  { %1458 = vmatmul.msk.bf16.vlgmr.msra.gmra.mxu3 %vm99_vm1, %v920_v51 }
 0xb85   :  { %v858_v52 = vpop.permute.xlu1 %857 }
 0xb86   :  { %1455 = vmatmul.msk.bf16.vlgmr.msra.gmra.mxu2 %vm99_vm1, %v858_v52 }
 0xbf9   :  { %v933_v56 = vpop.f32.mrf.mxu3 }
 0xbfa   :  { %v937_v57 = vadd.f32 %v933_v56, %v916_v55 }
 0xbfc   :  { %1569 = vtanh.f32 %v937_v57  ;;  %v1459_v17 = vmul.f32 -1.442695, %v937_v57 }
 0xc01   :  { %v935_v59 = vpop.f32.mrf.mxu3 }
 0xc02   :  { %v1570_v61 = vpop.eup %1569 }
 0xc03   :  { %960 = vrot.lane.b32.xlu1 %v1570_v61, %s1621_s17 }
 0xc09   :  { %v871_v2 = vpop.f32.mrf.mxu2 }
 0xc0a   :  { %v875_v6 = vadd.f32 %v871_v2, %v854_v63  ;;  %v1465_v2 = vld [vmem:[%s2152_s1 + $0x9] sm:$0x1] }
 0xc0c   :  { %1571 = vtanh.f32 %v875_v6  ;;  %v1456_v14 = vmul.f32 -1.442695, %v875_v6  ;;  %v1063_v6 = vunpack.c.l.bf16 %v1465_v2 }
 0xc0d   :  { %1573 = vpow2.f32 %v1459_v17 }
 0xc11   :  { %v873_v7 = vpop.f32.mrf.mxu2 }
 0xc12   :  { %v1572_v8 = vpop.eup %1571  ;;  %v1929_v7 = vld [vmem:[%s2150_s3 + $0x1] ss:$0 sm:$0xff] }
 0xc13   :  { %898 = vrot.lane.b32.xlu0 %v1572_v8, %s1621_s17  ;;  %v1574_v11 = vpop.eup %1573  ;;  %v1064_v8 = vadd.f32 %v1929_v7, %v1063_v6 }
 0xc14   :  { %v941_v12 = vadd.f32 1.0, %v1574_v11 }
 0xc16   :  { %1575 = vrcp.f32 %v941_v12  ;;  %v953_v26 = vand.u32 2147483648, %v941_v12  ;;  %vm947_vm15 = vweird.f32 %v941_v12  ;;  %v951_v28 = vand.u32 2147483647, %v941_v12 }
 0xc17   :  { %1577 = vpow2.f32 %v1456_v14 }
 0xc18   :  { %v954_v32 = vor.u32 1.1754944e-38, %v953_v26  ;;  %vm952_vm3 = vcmp.eq.f32.partialorder %v951_v28, 8.507059e+37 }
 0xc1c   :  { %v1576_v18 = vpop.eup %1575 }
 0xc1d   :  { %v1578_v19 = vpop.eup %1577  ;;  %v943_v60 = vmul.f32 %v1576_v18, %v941_v12  ;;  %vm948_vm14 = vweird.f32 %v1576_v18  ;;  %v1462_v12 = vld [vmem:[%s2151_s0 + $0x6] sm:$0x1] }
 0xc1e   :  { %v879_v21 = vadd.f32 1.0, %v1578_v19  ;;  %vm949_vm2 = vmor %vm947_vm15, %vm948_vm14  ;;  %v1001_v19 = vunpack.c.l.bf16 %v1462_v12 }
 0xc1f   :  { %v944_v22 = vsub.f32 1.0, %v943_v60  ;;  %v1939_v60 = vld [vmem:[%s2150_s3] ss:$0 sm:$0xff] }
 0xc20   :  { %1579 = vrcp.f32 %v879_v21  ;;  %v891_v40 = vand.u32 2147483648, %v879_v21  ;;  %vm885_vm5 = vweird.f32 %v879_v21  ;;  %v889_v42 = vand.u32 2147483647, %v879_v21 }
 0xc21   :  { %v945_v13 = vmul.f32 %v1576_v18, %v944_v22 }
 0xc22   :  { %v892_v1 = vor.u32 1.1754944e-38, %v891_v40  ;;  %vm890_vm7 = vcmp.eq.f32.partialorder %v889_v42, 8.507059e+37 }
 0xc23   :  { %v946_v24 = vadd.f32 %v1576_v18, %v945_v13 }
 0xc25   :  { %v950_v29 = vsel %vm949_vm2, %v1576_v18, %v946_v24 }
 0xc26   :  { %v1580_v25 = vpop.eup %1579  ;;  %v955_v33 = vsel %vm952_vm3, %v954_v32, %v950_v29 }
 0xc27   :  { %v881_v16 = vmul.f32 %v1580_v25, %v879_v21  ;;  %vm886_vm4 = vweird.f32 %v1580_v25  ;;  %v958_v48 = vmul.f32 %v955_v33, %v1872_v41  ;;  %v1002_v21 = vadd.f32 %v1939_v60, %v1001_v19 }
 0xc28   :  { %vm887_vm6 = vmor %vm885_vm5, %vm886_vm4  ;;  %vm237_vm5 = vcmask 1040384  }
 0xc29   :  { %v882_v37 = vsub.f32 1.0, %v881_v16 }
 0xc2b   :  { %v883_v27 = vmul.f32 %v1580_v25, %v882_v37 }
 0xc2d   :  { %v884_v39 = vadd.f32 %v1580_v25, %v883_v27 }
 0xc2f   :  { %v888_v43 = vsel %vm887_vm6, %v1580_v25, %v884_v39 }
 0xc30   :  { %v893_v44 = vsel %vm890_vm7, %v892_v1, %v888_v43 }
 0xc31   :  { %v896_v3 = vmul.f32 %v893_v44, %v1877_v4 }
 0xc75   :  { %v961_v10 = vpop.permute.xlu1 %960 }
 0xc76   :  { %v963_v36 = vmul.f32 %v961_v10, %v955_v33 }
 0xc78   :  { %965 = vrot.lane.b32.xlu0 %v963_v36, %s1620_s2 }
 0xc85   :  { %v899_v45 = vpop.permute.xlu0 %898 }
 0xc86   :  { %v901_v31 = vmul.f32 %v899_v45, %v893_v44 }
 0xc88   :  { %903 = vrot.lane.b32.xlu2 %v901_v31, %s1620_s2 }
 0xce2   :  { %v904_v46 = vpop.permute.xlu2 %903 }
 0xce3   :  { %v1904_v47 = vadd.f32 %v904_v46, %v896_v3 }
 0xce5   :  { %1581 = vtanh.f32 %v1904_v47 }
 0xcea   :  { %v966_v49 = vpop.permute.xlu0 %965 }
 0xceb   :  { %v1582_v50 = vpop.eup %1581  ;;  %v1908_v51 = vadd.f32 %v966_v49, %v958_v48 }
 0xcec   :  { %909 = vrot.lane.b32.xlu1 %v1582_v50, %s1621_s17 }
 0xced   :  { %1583 = vtanh.f32 %v1908_v51 }
 0xcf3   :  { %v1584_v52 = vpop.eup %1583 }
 0xcf4   :  { %971 = vrot.lane.b32.xlu2 %v1584_v52, %s1621_s17 }
 0xd4e   :  { %v972_v53 = vpop.permute.xlu2 %971 }
 0xd4f   :  { %v974_v4 = vmul.f32 %v972_v53, %v955_v33 }
 0xd51   :  { %v1913_v54 = vpack.c.bf16 %v974_v4, %v974_v4 }
 0xd53   :  { %v1065_v55 = vunpack.c.l.b16 %v1913_v54 }
 0xd55   :  { %v1066_v56 = vpack.c.b16 %v1065_v55, %v1065_v55 }
 0xd57   :  { %1067 = vrot.lane.b32.xlu1 %v1066_v56, %s1620_s2 }
 0xd5e   :  { %v910_v41 = vpop.permute.xlu1 %909 }
 0xd5f   :  { %v912_v57 = vmul.f32 %v910_v41, %v893_v44 }
 0xd61   :  { %v1917_v58 = vpack.c.bf16 %v912_v57, %v912_v57 }
 0xd63   :  { %v1003_v59 = vunpack.c.l.b16 %v1917_v58 }
 0xd65   :  { %v1004_v61 = vpack.c.b16 %v1003_v59, %v1003_v59 }
 0xd67   :  { %1005 = vrot.lane.b32.xlu0 %v1004_v61, %s1620_s2 }
 0xdc9   :  { %v1068_v62 = vpop.permute.xlu1 %1067 }
 0xdca   :  { %1466 = vmatmul.msk.bf16.vlgmr.msrb.gmra.mxu1 %vm99_vm1, %v1068_v62 }
 0xdd9   :  { %v1006_v63 = vpop.permute.xlu0 %1005 }
 0xdda   :  { %1463 = vmatmul.msk.bf16.vlgmr.msrb.gmra.mxu0 %vm99_vm1, %v1006_v63 }
 0xe47   :  { %v1081_v17 = vpop.f32.mrf.mxu1 }
 0xe48   :  { %v1085_v11 = vadd.f32 %v1081_v17, %v1064_v8 }
 0xe4a   :  { %1585 = vtanh.f32 %v1085_v11  ;;  %v1467_v28 = vmul.f32 -1.442695, %v1085_v11 }
 0xe4f   :  { %v1083_v14 = vpop.f32.mrf.mxu1 }
 0xe50   :  { %v1586_v18 = vpop.eup %1585 }
 0xe51   :  { %1108 = vrot.lane.b32.xlu0 %v1586_v18, %s1621_s17 }
 0xe57   :  { %v1019_v22 = vpop.f32.mrf.mxu0 }
 0xe58   :  { %v1023_v13 = vadd.f32 %v1019_v22, %v1002_v21 }
 0xe5a   :  { %1587 = vtanh.f32 %v1023_v13  ;;  %v1464_v26 = vmul.f32 -1.442695, %v1023_v13 }
 0xe5c   :  { %1589 = vpow2.f32 %v1464_v26  ;;  %v1470_v26 = vld [vmem:[%s2151_s0 + $0x7] sm:$0x1] }
 0xe5d   :  { %1591 = vpow2.f32 %v1467_v28  ;;  %v1149_v28 = vunpack.c.l.bf16 %v1470_v26 }
 0xe5f   :  { %v1021_v24 = vpop.f32.mrf.mxu0 }
 0xe60   :  { %v1588_v25 = vpop.eup %1587 }
 0xe61   :  { %1046 = vrot.lane.b32.xlu2 %v1588_v25, %s1621_s17 }
 0xe62   :  { %v1590_v29 = vpop.eup %1589 }
 0xe63   :  { %v1027_v16 = vadd.f32 1.0, %v1590_v29  ;;  %v1592_v32 = vpop.eup %1591  ;;  %v1150_v29 = vadd.f32 %v1939_v60, %v1149_v28  ;;  %v841_v28 = vrot.slane %v1885_v35, 3 }
 0xe64   :  { %v1089_v10 = vadd.f32 1.0, %v1592_v32 }
 0xe65   :  { %1593 = vrcp.f32 %v1027_v16  ;;  %v1039_v1 = vand.u32 2147483648, %v1027_v16  ;;  %vm1033_vm9 = vweird.f32 %v1027_v16  ;;  %v1037_v44 = vand.u32 2147483647, %v1027_v16 }
 0xe66   :  { %1595 = vrcp.f32 %v1089_v10  ;;  %v1101_v52 = vand.u32 2147483648, %v1089_v10  ;;  %vm1095_vm13 = vweird.f32 %v1089_v10  ;;  %v1099_v53 = vand.u32 2147483647, %v1089_v10 }
 0xe67   :  { %v1040_v3 = vor.u32 1.1754944e-38, %v1039_v1  ;;  %vm1038_vm11 = vcmp.eq.f32.partialorder %v1037_v44, 8.507059e+37 }
 0xe68   :  { %v1102_v55 = vor.u32 1.1754944e-38, %v1101_v52  ;;  %vm1100_vm15 = vcmp.eq.f32.partialorder %v1099_v53, 8.507059e+37 }
 0xe6b   :  { %v1594_v33 = vpop.eup %1593 }
 0xe6c   :  { %v1029_v36 = vmul.f32 %v1594_v33, %v1027_v16  ;;  %v1596_v27 = vpop.eup %1595  ;;  %vm1034_vm8 = vweird.f32 %v1594_v33  ;;  %v1473_v16 = vld [vmem:[%s2152_s1 + $0x8] sm:$0x1] }
 0xe6d   :  { %v1091_v40 = vmul.f32 %v1596_v27, %v1089_v10  ;;  %vm1035_vm10 = vmor %vm1033_vm9, %vm1034_vm8  ;;  %vm1096_vm12 = vweird.f32 %v1596_v27 }
 0xe6e   :  { %v1030_v37 = vsub.f32 1.0, %v1029_v36  ;;  %vm1097_vm14 = vmor %vm1095_vm13, %vm1096_vm12 }
 0xe6f   :  { %v1092_v43 = vsub.f32 1.0, %v1091_v40 }
 0xe70   :  { %v1031_v39 = vmul.f32 %v1594_v33, %v1030_v37 }
 0xe71   :  { %v1093_v31 = vmul.f32 %v1596_v27, %v1092_v43 }
 0xe72   :  { %v1032_v42 = vadd.f32 %v1594_v33, %v1031_v39 }
 0xe73   :  { %v1094_v50 = vadd.f32 %v1596_v27, %v1093_v31 }
 0xe74   :  { %v1036_v45 = vsel %vm1035_vm10, %v1594_v33, %v1032_v42  ;;  %v1210_v33 = vunpack.c.l.bf16 %v1473_v16  ;;  %vm245_vm10 = vcmask 253952  }
 0xe75   :  { %v1041_v48 = vsel %vm1038_vm11, %v1040_v3, %v1036_v45  ;;  %v1098_v4 = vsel %vm1097_vm14, %v1596_v27, %v1094_v50 }
 0xe76   :  { %v1103_v56 = vsel %vm1100_vm15, %v1102_v55, %v1098_v4  ;;  %v1044_v2 = vmul.f32 %v1041_v48, %v1904_v47  ;;  %v1211_v36 = vadd.f32 %v1929_v7, %v1210_v33 }
 0xe77   :  { %v1106_v59 = vmul.f32 %v1103_v56, %v1908_v51 }
 0xebb   :  { %v1047_v46 = vpop.permute.xlu2 %1046 }
 0xebc   :  { %v1049_v49 = vmul.f32 %v1047_v46, %v1041_v48 }
 0xebe   :  { %1051 = vrot.lane.b32.xlu1 %v1049_v49, %s1620_s2 }
 0xec3   :  { %v1109_v41 = vpop.permute.xlu0 %1108 }
 0xec4   :  { %v1111_v57 = vmul.f32 %v1109_v41, %v1103_v56 }
 0xec6   :  { %1113 = vrot.lane.b32.xlu2 %v1111_v57, %s1620_s2 }
 0xf20   :  { %v1114_v61 = vpop.permute.xlu2 %1113 }
 0xf21   :  { %v1946_v62 = vadd.f32 %v1114_v61, %v1106_v59 }
 0xf23   :  { %1597 = vtanh.f32 %v1946_v62 }
 0xf29   :  { %v1598_v63 = vpop.eup %1597 }
 0xf2a   :  { %1119 = vrot.lane.b32.xlu1 %v1598_v63, %s1621_s17 }
 0xf30   :  { %v1052_v6 = vpop.permute.xlu1 %1051 }
 0xf31   :  { %v1951_v8 = vadd.f32 %v1052_v6, %v1044_v2  ;;  %v236_v6 = vrot.slane %v1745_v15, 3 }
 0xf33   :  { %1599 = vtanh.f32 %v1951_v8 }
 0xf39   :  { %v1600_v17 = vpop.eup %1599 }
 0xf3a   :  { %1057 = vrot.lane.b32.xlu0 %v1600_v17, %s1621_s17 }
 0xf9c   :  { %v1120_v11 = vpop.permute.xlu1 %1119 }
 0xf9d   :  { %v1122_v51 = vmul.f32 %v1120_v11, %v1103_v56  ;;  %v240_v11 = vsel %vm237_vm5, %v1745_v15, %v236_v6  ;;  %v681_v15 = vrot.slane %v1853_v23, 3 }
 0xf9f   :  { %v1955_v12 = vpack.c.bf16 %v1122_v51, %v1122_v51  ;;  %v684_v26 = vsel %vm237_vm5, %v1853_v23, %v681_v15 }
 0xfa1   :  { %v1212_v14 = vunpack.c.l.b16 %v1955_v12 }
 0xfa3   :  { %v1213_v18 = vpack.c.b16 %v1212_v14, %v1212_v14 }
 0xfa5   :  { %1214 = vrot.lane.b32.xlu0 %v1213_v18, %s1620_s2 }
 0xfac   :  { %v1058_v19 = vpop.permute.xlu0 %1057 }
 0xfad   :  { %v1060_v21 = vmul.f32 %v1058_v19, %v1041_v48  ;;  %v397_v19 = vrot.slane %v1781_v5, 3 }
 0xfaf   :  { %v1959_v47 = vpack.c.bf16 %v1060_v21, %v1060_v21 }
 0xfb1   :  { %v1151_v22 = vunpack.c.l.b16 %v1959_v47 }
 0xfb3   :  { %v1152_v13 = vpack.c.b16 %v1151_v22, %v1151_v22 }
 0xfb5   :  { %1153 = vrot.lane.b32.xlu2 %v1152_v13, %s1620_s2 }
0x100f   :  { %v1154_v24 = vpop.permute.xlu2 %1153 }
0x1010   :  { %1471 = vmatmul.msk.bf16.vlgmr.msrb.gmra.mxu2 %vm99_vm1, %v1154_v24 }
0x1017   :  { %v1215_v25 = vpop.permute.xlu0 %1214 }
0x1018   :  { %1474 = vmatmul.msk.bf16.vlgmr.msrb.gmra.mxu3 %vm99_vm1, %v1215_v25  ;;  %v400_v25 = vsel %vm237_vm5, %v1781_v5, %v397_v19  ;;  %v1125_v5 = vrot.slane %v1959_v47, 3 }
0x101a   :  { %v1128_v16 = vsel %vm237_vm5, %v1959_v47, %v1125_v5  ;;  %v385_v47 = vrot.slane %v1777_v20, 3 }
0x1093   :  { %v1167_v32 = vpop.f32.mrf.mxu2 }
0x1094   :  { %v1171_v10 = vadd.f32 %v1167_v32, %v1150_v29  ;;  %v844_v29 = vsel %vm237_vm5, %v1885_v35, %v841_v28 }
0x1096   :  { %1601 = vtanh.f32 %v1171_v10  ;;  %v1472_v45 = vmul.f32 -1.442695, %v1171_v10 }
0x109b   :  { %v1169_v37 = vpop.f32.mrf.mxu2  ;;  %v1228_v27 = vpop.f32.mrf.mxu3 }
0x109c   :  { %v1602_v39 = vpop.eup %1601  ;;  %v1232_v40 = vadd.f32 %v1228_v27, %v1211_v36 }
0x109d   :  { %1194 = vrot.lane.b32.xlu1 %v1602_v39, %s1621_s17  ;;  %v388_v39 = vsel %vm237_vm5, %v1777_v20, %v385_v47  ;;  %v249_v20 = vrot.slane %v1741_v9, 3 }
0x109e   :  { %1603 = vtanh.f32 %v1232_v40  ;;  %v1475_v60 = vmul.f32 -1.442695, %v1232_v40  ;;  %v545_v40 = vrot.slane %v1813_v30, 3 }
0x10a0   :  { %1605 = vpow2.f32 %v1475_v60  ;;  %v829_v60 = vrot.slane %v1881_v0, 3 }
0x10a3   :  { %v1230_v42 = vpop.f32.mrf.mxu3 }
0x10a4   :  { %v1604_v43 = vpop.eup %1603 }
0x10a5   :  { %1255 = vrot.lane.b32.xlu2 %v1604_v43, %s1621_s17  ;;  %v548_v43 = vsel %vm237_vm5, %v1813_v30, %v545_v40  ;;  %v252_v30 = vsel %vm237_vm5, %v1741_v9, %v249_v20 }
0x10a6   :  { %v1606_v1 = vpop.eup %1605 }
0x10a7   :  { %v1236_v44 = vadd.f32 1.0, %v1606_v1 }
0x10a9   :  { %1607 = vrcp.f32 %v1236_v44  ;;  %v1248_v53 = vand.u32 2147483648, %v1236_v44  ;;  %vm1242_vm2 = vweird.f32 %v1236_v44  ;;  %v1246_v4 = vand.u32 2147483647, %v1236_v44 }
0x10aa   :  { %1609 = vpow2.f32 %v1472_v45  ;;  %v533_v45 = vrot.slane %v1817_v34, 3 }
0x10ab   :  { %v1249_v41 = vor.u32 1.1754944e-38, %v1248_v53  ;;  %vm1247_vm4 = vcmp.eq.f32.partialorder %v1246_v4, 8.507059e+37 }
0x10ac   :  { %v536_v9 = vsel %vm237_vm5, %v1817_v34, %v533_v45  ;;  %v1137_v34 = vrot.slane %v1955_v12, 3 }
0x10af   :  { %v1608_v31 = vpop.eup %1607 }
0x10b0   :  { %v1610_v7 = vpop.eup %1609  ;;  %v1238_v3 = vmul.f32 %v1608_v31, %v1236_v44  ;;  %vm1243_vm1 = vweird.f32 %v1608_v31  ;;  %v832_v44 = vsel %vm237_vm5, %v1881_v0, %v829_v60 }
0x10b1   :  { %v1175_v46 = vadd.f32 1.0, %v1610_v7  ;;  %vm1244_vm3 = vmor %vm1242_vm2, %vm1243_vm1 }
0x10b2   :  { %v1239_v48 = vsub.f32 1.0, %v1238_v3  ;;  %v693_v3 = vrot.slane %v1849_v38, 3 }
0x10b3   :  { %1611 = vrcp.f32 %v1175_v46  ;;  %v1187_v51 = vand.u32 2147483648, %v1175_v46  ;;  %vm1181_vm7 = vweird.f32 %v1175_v46  ;;  %v1185_v14 = vand.u32 2147483647, %v1175_v46 }
0x10b4   :  { %v1240_v49 = vmul.f32 %v1608_v31, %v1239_v48  ;;  %v977_v48 = vrot.slane %v1917_v58, 3 }
0x10b5   :  { %v1188_v21 = vor.u32 1.1754944e-38, %v1187_v51  ;;  %vm1186_vm9 = vcmp.eq.f32.partialorder %v1185_v14, 8.507059e+37 }
0x10b6   :  { %v1241_v50 = vadd.f32 %v1608_v31, %v1240_v49  ;;  %v980_v49 = vsel %vm237_vm5, %v1917_v58, %v977_v48 }
0x10b8   :  { %v1245_v55 = vsel %vm1244_vm3, %v1608_v31, %v1241_v50  ;;  %v989_v31 = vrot.slane %v1913_v54, 3 }
0x10b9   :  { %v1612_v52 = vpop.eup %1611  ;;  %v1975_v59 = vsel %vm1247_vm4, %v1249_v41, %v1245_v55 }
0x10ba   :  { %v1177_v56 = vmul.f32 %v1612_v52, %v1175_v46  ;;  %vm1182_vm6 = vweird.f32 %v1612_v52  ;;  %v1253_v32 = vmul.f32 %v1975_v59, %v1946_v62  ;;  %v992_v0 = vsel %vm237_vm5, %v1913_v54, %v989_v31 }
0x10bb   :  { %vm1183_vm8 = vmor %vm1181_vm7, %vm1182_vm6  ;;  %v696_v46 = vsel %vm237_vm5, %v1849_v38, %v693_v3  ;;  %v1140_v54 = vsel %vm237_vm5, %v1955_v12, %v1137_v34 }
0x10bc   :  { %v1178_v63 = vsub.f32 1.0, %v1177_v56 }
0x10be   :  { %v1179_v2 = vmul.f32 %v1612_v52, %v1178_v63 }
0x10c0   :  { %v1180_v17 = vadd.f32 %v1612_v52, %v1179_v2 }
0x10c2   :  { %v1184_v18 = vsel %vm1183_vm8, %v1612_v52, %v1180_v17 }
0x10c3   :  { %v1984_v13 = vsel %vm1186_vm9, %v1188_v21, %v1184_v18 }
0x10c4   :  { %v1192_v62 = vmul.f32 %v1984_v13, %v1951_v8 }
0x10ff   :  { %v1256_v57 = vpop.permute.xlu2 %1255 }
0x1100   :  { %v1258_v61 = vmul.f32 %v1256_v57, %v1975_v59 }
0x1102   :  { %1260 = vrot.lane.b32.xlu1 %v1258_v61, %s1620_s2 }
0x110a   :  { %242 = vrot.lane.b32.xlu1 %v240_v11, %s1620_s2 }
0x110f   :  { %v1195_v22 = vpop.permute.xlu1 %1194 }
0x1110   :  { %v1197_v24 = vmul.f32 %v1195_v22, %v1984_v13 }
0x1112   :  { %1199 = vrot.lane.b32.xlu0 %v1197_v24, %s1620_s2  ;;  %402 = vrot.lane.b32.xlu1 %v400_v25, %s1620_s2 }
0x111a   :  { %686 = vrot.lane.b32.xlu1 %v684_v26, %s1620_s2 }
0x1122   :  { %846 = vrot.lane.b32.xlu1 %v844_v29, %s1620_s2 }
0x112a   :  { %1130 = vrot.lane.b32.xlu1 %v1128_v16, %s1620_s2 }
0x1174   :  { %v1261_v23 = vpop.permute.xlu1 %1260 }
0x1175   :  { %v2005_v10 = vadd.f32 %v1261_v23, %v1253_v32 }
0x1177   :  { %1613 = vtanh.f32 %v2005_v10 }
0x117c   :  { %v243_v33 = vpop.permute.xlu1 %242 }
0x117d   :  { %v1614_v35 = vpop.eup %1613  ;;  %246 = vst.msk [vmem:[%s2153_s4] sm:$0x1] %vm245_vm10, %v243_v33 }
0x117e   :  { %1266 = vrot.lane.b32.xlu0 %v1614_v35, %s1621_s17 }
0x1184   :  { %v403_v36 = vpop.permute.xlu1 %402  ;;  %v1200_v37 = vpop.permute.xlu0 %1199 }
0x1185   :  { %1429 = vst.msk [vmem:[%s2154_s5 + $0x6] sm:$0x1] %vm245_vm10, %v403_v36  ;;  %v2020_v27 = vadd.f32 %v1200_v37, %v1192_v62 }
0x1186   :  { %390 = vrot.lane.b32.xlu0 %v388_v39, %s1620_s2 }
0x1187   :  { %1615 = vtanh.f32 %v2020_v27 }
0x118c   :  { %v687_v42 = vpop.permute.xlu1 %686 }
0x118d   :  { %v1616_v8 = vpop.eup %1615  ;;  %1444 = vst.msk [vmem:[%s2153_s4 + $0x3] sm:$0x1] %vm245_vm10, %v687_v42 }
0x118e   :  { %550 = vrot.lane.b32.xlu0 %v548_v43, %s1620_s2  ;;  %1205 = vrot.lane.b32.xlu2 %v1616_v8, %s1621_s17 }
0x1194   :  { %v847_v1 = vpop.permute.xlu1 %846 }
0x1195   :  { %1453 = vst.msk [vmem:[%s2154_s5 + $0x3] sm:$0x1] %vm245_vm10, %v847_v1 }
0x1196   :  { %834 = vrot.lane.b32.xlu0 %v832_v44, %s1620_s2  ;;  %254 = vrot.lane.b32.xlu2 %v252_v30, %s1620_s2 }
0x119c   :  { %v1131_v7 = vpop.permute.xlu1 %1130 }
0x119d   :  { %1468 = vst.msk [vmem:[%s2153_s4 + $0x6] sm:$0x1] %vm245_vm10, %v1131_v7 }
0x119e   :  { %994 = vrot.lane.b32.xlu0 %v992_v0, %s1620_s2  ;;  %538 = vrot.lane.b32.xlu2 %v536_v9, %s1620_s2 }
0x11a6   :  { %698 = vrot.lane.b32.xlu2 %v696_v46, %s1620_s2 }
0x11ae   :  { %982 = vrot.lane.b32.xlu2 %v980_v49, %s1620_s2 }
0x11b6   :  { %1142 = vrot.lane.b32.xlu2 %v1140_v54, %s1620_s2 }
0x11e8   :  { %v1206_v50 = vpop.permute.xlu2 %1205 }
0x11e9   :  { %v1208_v52 = vmul.f32 %v1206_v50, %v1984_v13 }
0x11eb   :  { %v1270_v38 = vpack.c.bf16 %v1208_v52, %v1208_v52  ;;  %1294 = vst [vmem:[#allocation1] ss:$4 sm:$0xff] %v1208_v52 }
0x11ed   :  { %v1272_v53 = vrot.slane %v1270_v38, 3 }
0x11ef   :  { %v1275_v4 = vsel %vm237_vm5, %v1270_v38, %v1272_v53 }
0x11f0   :  { %1277 = vrot.lane.b32.xlu0 %v1275_v4, %s1620_s2  ;;  %v255_v58 = vpop.permute.xlu2 %254  ;;  %v1267_v55 = vpop.permute.xlu0 %1266 }
0x11f1   :  { %1421 = vst.msk [vmem:[%s2154_s5 + $0x7] sm:$0x1] %vm245_vm10, %v255_v58  ;;  %v1269_v12 = vmul.f32 %v1267_v55, %v1975_v59 }
0x11f2   :  { %v1295_v56 = vld.sshfl [vmem:[#allocation1] sm:$0xff pattern:$0x73625140] }
0x11f3   :  { %1302 = vst [vmem:[#allocation1] ss:$4 sm:$0xff] %v2020_v27  ;;  %v1282_v41 = vpack.c.bf16 %v1269_v12, %v1269_v12  ;;  %1296 = vrot.lane.b32.xlu2 %v1295_v56, %s1620_s2 }
0x11f5   :  { %v1284_v57 = vrot.slane %v1282_v41, 3 }
0x11f7   :  { %v1287_v61 = vsel %vm237_vm5, %v1282_v41, %v1284_v57 }
0x11f8   :  { %v539_v63 = vpop.permute.xlu2 %538  ;;  %1289 = vrot.lane.b32.xlu1 %v1287_v61, %s1620_s2  ;;  %v391_v2 = vpop.permute.xlu0 %390 }
0x11f9   :  { %1436 = vst.msk [vmem:[%s2153_s4 + $0x2] sm:$0x1] %vm245_vm10, %v539_v63 }
0x11fa   :  { %v1303_v6 = vld.sshfl [vmem:[#allocation1] sm:$0xff pattern:$0x73625140]  ;;  %1428 = vst.msk [vmem:[%s2153_s4 + $0x1] sm:$0x1] %vm245_vm10, %v391_v2 }
0x11fb   :  { %1309 = vst [vmem:[#allocation1] ss:$4 sm:$0xff] %v1269_v12  ;;  %1304 = vrot.lane.b32.xlu0 %v1303_v6, %s1622_s18 }
0x1200   :  { %v699_v59 = vpop.permute.xlu2 %698  ;;  %v551_v17 = vpop.permute.xlu0 %550 }
0x1201   :  { %1445 = vst.msk [vmem:[%s2154_s5 + $0x4] sm:$0x1] %vm245_vm10, %v699_v59 }
0x1202   :  { %1437 = vst.msk [vmem:[%s2154_s5 + $0x5] sm:$0x1] %vm245_vm10, %v551_v17  ;;  %v1310_v11 = vld.sshfl [vmem:[#allocation1] sm:$0xff pattern:$0x73625140] }
0x1203   :  { %1316 = vst [vmem:[#allocation1] ss:$4 sm:$0xff] %v2005_v10  ;;  %1311 = vrot.lane.b32.xlu1 %v1310_v11, %s1620_s2 }
0x1208   :  { %v983_v51 = vpop.permute.xlu2 %982  ;;  %v835_v14 = vpop.permute.xlu0 %834 }
0x1209   :  { %1460 = vst.msk [vmem:[%s2153_s4 + $0x5] sm:$0x1] %vm245_vm10, %v983_v51 }
0x120a   :  { %1452 = vst.msk [vmem:[%s2153_s4 + $0x4] sm:$0x1] %vm245_vm10, %v835_v14  ;;  %v1317_v18 = vld.sshfl [vmem:[#allocation1] sm:$0xff pattern:$0x73625140] }
0x120b   :  { %1318 = vrot.lane.b32.xlu2 %v1317_v18, %s1622_s18  ;;  %1325 = vst [vmem:[#allocation1] ss:$4 sm:$0xff] %v1208_v52 }
0x1210   :  { %v1143_v19 = vpop.permute.xlu2 %1142  ;;  %v995_v21 = vpop.permute.xlu0 %994 }
0x1211   :  { %1469 = vst.msk [vmem:[%s2154_s5 + $0x1] sm:$0x1] %vm245_vm10, %v1143_v19 }
0x1212   :  { %1461 = vst.msk [vmem:[%s2154_s5 + $0x2] sm:$0x1] %vm245_vm10, %v995_v21  ;;  %v1326_v22 = vld.sshfl [vmem:[#allocation1] sm:$0xff pattern:$0x73625140] }
0x1213   :  { %1327 = vrot.lane.b32.xlu0 %v1326_v22, %s1620_s2  ;;  %1331 = vst [vmem:[#allocation1] ss:$4 sm:$0xff] %v2020_v27 }
0x121a   :  { %v1332_v13 = vld.sshfl [vmem:[#allocation1] sm:$0xff pattern:$0x73625140] }
0x121b   :  { %1337 = vst [vmem:[#allocation1] ss:$4 sm:$0xff] %v1269_v12  ;;  %1333 = vrot.lane.b32.xlu1 %v1332_v13, %s1622_s18 }
0x1222   :  { %v1338_v24 = vld.sshfl [vmem:[#allocation1] sm:$0xff pattern:$0x73625140] }
0x1223   :  { %1339 = vrot.lane.b32.xlu2 %v1338_v24, %s1620_s2  ;;  %1344 = vst [vmem:[#allocation1] ss:$4 sm:$0xff] %v2005_v10 }
0x122a   :  { %v1345_v25 = vld.sshfl [vmem:[#allocation1] sm:$0xff pattern:$0x73625140] }
0x122b   :  { %1346 = vrot.lane.b32.xlu0 %v1345_v25, %s1622_s18 }
0x124d   :  { %v1297_v15 = vpop.permute.xlu2 %1296 }
0x124e   :  { %1300 = vst.msk [vmem:[#allocation2] sm:$0x3] %vm60_vm0, %v1297_v15 }
0x1262   :  { %v1278_v26 = vpop.permute.xlu0 %1277 }
0x1263   :  { %1476 = vst.msk [vmem:[%s2153_s4 + $0x7] sm:$0x1] %vm245_vm10, %v1278_v26 }
0x1265   :  { %v1319_v28 = vpop.permute.xlu2 %1318 }
0x1266   :  { %1321 = vst.msk [vmem:[#allocation3 + $0x2] sm:$0x3] %vm60_vm0, %v1319_v28 }
0x126a   :  { %v1290_v29 = vpop.permute.xlu1 %1289 }
0x126b   :  { %1292 = vst.msk [vmem:[%s2154_s5] sm:$0x1] %vm245_vm10, %v1290_v29 }
0x126d   :  { %v1305_v5 = vpop.permute.xlu0 %1304 }
0x126e   :  { %1307 = vst.msk [vmem:[#allocation3] sm:$0x3] %vm60_vm0, %v1305_v5 }
0x1275   :  { %v1312_v16 = vpop.permute.xlu1 %1311 }
0x1276   :  { %1314 = vst.msk [vmem:[#allocation2 + $0x2] sm:$0x3] %vm60_vm0, %v1312_v16 }
0x127d   :  { %v1340_v32 = vpop.permute.xlu2 %1339 }
0x127e   :  { %1477 = vst.msk [vmem:[%s2155_s6 + $0x2] sm:$0x3] %vm60_vm0, %v1340_v32 }
0x1285   :  { %v1328_v23 = vpop.permute.xlu0 %1327 }
0x1286   :  { %1330 = vst.msk [vmem:[%s2155_s6] sm:$0x3] %vm60_vm0, %v1328_v23 }
0x128d   :  { %v1334_v10 = vpop.permute.xlu1 %1333 }
0x128e   :  { %1336 = vst.msk [vmem:[%s2156_s7] sm:$0x3] %vm60_vm0, %v1334_v10 }
0x129d   :  { %v1347_v33 = vpop.permute.xlu0 %1346 }
0x129e   :  { %1478 = vst.msk [vmem:[%s2156_s7 + $0x2] sm:$0x3] %vm60_vm0, %v1347_v33 }

</bundles_post_ra>
